<compile_context>
chip_gen: v7x
topology: tpu7x:2x2x1
jax: 0.10.0
libtpu: 0.0.40
codegen_flags: <defaults>
</compile_context>

<pallas_src>
import math
from functools import partial

import jax
import jax.numpy as jnp
from jax.experimental import pallas as pl
from jax.experimental.pallas import tpu as pltpu

LANE = 128


# ----------------------------- shared math helpers ----------------------------

def _gelu(x):
    # tanh-approximate GELU (see TODO above).
    c = math.sqrt(2.0 / math.pi)
    return 0.5 * x * (1.0 + jnp.tanh(c * (x + 0.044715 * x * x * x)))


def _bn_eval(x, bn, eps=1e-5):
    # bn rows: [gamma, beta, running_mean, running_var]; eval-mode BatchNorm1d.
    gamma, beta, mean, var = bn[0:1], bn[1:2], bn[2:3], bn[3:4]
    return (x - mean) * jax.lax.rsqrt(var + eps) * gamma + beta


def _bn_fold(w, b, bn, eps=1e-5):
    # Fold eval-mode BN into the preceding Linear (w: (in,out), b: (1,out)).
    gamma, beta, mean, var = bn[0], bn[1], bn[2], bn[3]
    s = gamma * jax.lax.rsqrt(var + eps)
    return w * s[None, :], (b - mean[None, :]) * s[None, :] + beta[None, :]


def _round_up(x, m):
    return ((x + m - 1) // m) * m


# --------------------------------- the kernel ---------------------------------

def _forward_kernel(Kp, offs, xin_ref, w_ref, b_ref, out_ref):
    f32 = jnp.float32
    o_in, o_vo, o_h0p0, o_h1, o_out = offs

    def mm(x, off, width):
        # MXU matmul against a 128-lane-aligned static slice of the weight slab;
        # operands in w_ref.dtype (bf16 by default), f32 accumulation.
        return jnp.dot(x.astype(w_ref.dtype), w_ref[:, off:off + width],
                       preferred_element_type=f32)

    def bias(off, width):
        return b_ref[:, off:off + width]

    # 0) fused input branches: block-diag [cont | one-hot(cat)] linear (BN folded).
    x = _gelu(mm(xin_ref[...], o_in, Kp) + bias(o_in, Kp))
    # 1) attention, seq_len == 1: softmax == 1 => out_proj(value(x)), pre-fused.
    x = mm(x, o_vo, Kp) + bias(o_vo, Kp)
    # 2) hidden block 0: GELU branch (BN folded) + residual projection fused into a
    #    single (Kp, 2*Kp) matmul; each half is Kp lanes so the split is tile-aligned.
    y = mm(x, o_h0p0, 2 * Kp) + bias(o_h0p0, 2 * Kp)
    x = _gelu(y[:, :Kp]) + y[:, Kp:]
    # 3) hidden block 1: identity residual (H1 == H0), BN folded.
    x = _gelu(mm(x, o_h1, Kp) + bias(o_h1, Kp)) + x
    # 4) lane-dense output head (unmasked vst); column 0 is the real output.
    out_ref[...] = mm(x, o_out, Kp) + bias(o_out, Kp)


# --------------------------- host-side weight fusion ---------------------------

def prepare_fused_params(params, *, matmul_dtype=jnp.bfloat16):
    """Call ONCE per parameter set (hoisted out of the forward path).

    Returns (fused, meta):
      fused = {"w": (Kp, 6*Kp) weight slab in matmul_dtype, "b": (1, 6*Kp) f32 biases}
      meta  = static python config (dims, lane offsets, categorical sizes).
    """
    # input branches, BN folded
    w_feat, b_feat = _bn_fold(params["w_feat"], params["b_feat"], params["bn_feat"])
    w_embl, b_embl = _bn_fold(params["w_embl"], params["b_embl"], params["bn_emb"])
    F, P = w_feat.shape
    E = w_embl.shape[1]
    D = P + E

    # fold the embedding lookup through the emb-branch linear:
    #   embs @ W = (onehot(cat) @ T_stacked) @ W = onehot(cat) @ (T_stacked @ W)
    T = jnp.concatenate([jnp.asarray(t, jnp.float32) for t in params["emb_tables"]],
                        axis=0)                               # (sum_cats, E)
    w_embf = T @ w_embl
    C = T.shape[0]
    Fin = F + C

    # attention with seq_len == 1: fuse value + out_proj
    w_vo = params["w_v"] @ params["w_o"]
    b_vo = params["b_v"] @ params["w_o"] + params["b_o"]

    # hidden blocks, BN folded
    w_h0, b_h0 = _bn_fold(params["w_h0"], params["b_h0"], params["bn_h0"])
    H0 = w_h0.shape[1]
    w_h1, b_h1 = _bn_fold(params["w_h1"], params["b_h1"], params["bn_h1"])
    H1 = w_h1.shape[1]
    assert H0 == H1, "kernel specialized to the 2-block config with H0 == H1"

    # Common padded width: inputs, hidden activations and the output block all live
    # in Kp lanes, so every in-kernel slice is 128-lane-aligned and every matmul
    # shares the slab's Kp contraction rows.  Padding is exact zeros end-to-end.
    Kp = _round_up(max(Fin, D, H0, H1), LANE)
    offs = (0, Kp, 2 * Kp, 4 * Kp, 5 * Kp)        # in, vo, h0|p0, h1, out
    S = 6 * Kp
    o_in, o_vo, o_h0p0, o_h1, o_out = offs

    W = jnp.zeros((Kp, S), jnp.float32)
    Bv = jnp.zeros((1, S), jnp.float32)

    # seg 0: block-diagonal input weight over [cont | one-hot(cat)]
    W = W.at[:F, o_in:o_in + P].set(w_feat)
    W = W.at[F:F + C, o_in + P:o_in + D].set(w_embf)
    Bv = Bv.at[:, o_in:o_in + D].set(jnp.concatenate([b_feat, b_embl], axis=1))

    # seg 1: fused value @ out_proj
    W = W.at[:D, o_vo:o_vo + D].set(w_vo)
    Bv = Bv.at[:, o_vo:o_vo + D].set(b_vo)

    # seg 2: hidden block 0 GELU branch | residual projection (each half Kp lanes)
    W = W.at[:D, o_h0p0:o_h0p0 + H0].set(w_h0)
    W = W.at[:D, o_h0p0 + Kp:o_h0p0 + Kp + H0].set(params["w_p0"])
    Bv = Bv.at[:, o_h0p0:o_h0p0 + H0].set(b_h0)
    Bv = Bv.at[:, o_h0p0 + Kp:o_h0p0 + Kp + H0].set(params["b_p0"])

    # seg 3: hidden block 1
    W = W.at[:H0, o_h1:o_h1 + H1].set(w_h1)
    Bv = Bv.at[:, o_h1:o_h1 + H1].set(b_h1)

    # seg 4: output head, column 0 real (lane-dense store; wrapper slices col 0)
    W = W.at[:H1, o_out:o_out + 1].set(params["w_out"])
    Bv = Bv.at[:, o_out:o_out + 1].set(params["b_out"])

    fused = {"w": W.astype(matmul_dtype), "b": Bv}
    meta = dict(Kp=int(Kp), Fin=int(Fin), D=int(D), H0=int(H0), offs=offs,
                cat_sizes=tuple(int(t.shape[0]) for t in params["emb_tables"]))
    return fused, meta


# ------------------------------- python wrapper --------------------------------

def _forward_impl(cont_features, cat_features, w_slab, b_slab, *,
                  meta, batch_tile_cap=512):
    Kp = meta["Kp"]
    offs = meta["offs"]
    cat_sizes = meta["cat_sizes"]

    cont = jnp.asarray(cont_features, jnp.float32)
    B = cont.shape[0]

    # Embedding lookup folded into the first matmul: build the concatenated one-hot
    # (entries 0/1 => exact in bf16) instead of 3 gathers + adds + concat.
    col_off, acc = [], 0
    for s in cat_sizes:
        col_off.append(acc)
        acc += s
    flat = cat_features + jnp.asarray(col_off, cat_features.dtype)[None, :]
    onehot = jax.nn.one_hot(flat, acc, dtype=jnp.float32).sum(axis=1)    # (B, sum_cats)
    xin = jnp.concatenate([cont, onehot], axis=1)                         # (B, Fin)

    # Fixed batch-tile cap (VMEM-safe incl. v7x's 64 MiB), multiple of 16 for bf16
    # LHS packing.  Small batches => a single grid step (no per-step overhead on
    # 1-TC v5e/v6e); large batches => multiple "parallel" points for v7x sharding.
    batch_tile = min(batch_tile_cap, _round_up(B, 16))
    Bp = _round_up(B, batch_tile)

    # Pad features to Kp lanes (zero cols x zero weight rows => exact) and pad batch.
    xin = jnp.pad(xin, ((0, Bp - B), (0, Kp - xin.shape[1]))).astype(w_slab.dtype)
    # TODO(synk): cont features are quantized to w_slab.dtype here; keep the first
    # layer's LHS in f32 if input dynamic range ever makes the bf16 bound too loose.

    out = pl.pallas_call(
        partial(_forward_kernel, Kp, offs),
        out_shape=jax.ShapeDtypeStruct((Bp, Kp), jnp.float32),
        grid=(Bp // batch_tile,),
        in_specs=[pl.BlockSpec((batch_tile, Kp), lambda i: (i, 0)),
                  pl.BlockSpec(w_slab.shape, lambda i: (0, 0)),
                  pl.BlockSpec(b_slab.shape, lambda i: (0, 0))],
        out_specs=pl.BlockSpec((batch_tile, Kp), lambda i: (i, 0)),
        compiler_params=pltpu.CompilerParams(dimension_semantics=("parallel",)),
    )(xin, w_slab, b_slab)

    # TODO(synk): at very large B the (Bp, 128) f32 output block is write-amplified
    # 128x; transpose batch into lanes (or emit bf16) if writeback ever dominates.
    return out[:B, 0]


def make_forward(meta, *, batch_tile_cap=512):
    """Build a jitted forward; reuse it (and the fused params) across calls."""
    return jax.jit(partial(_forward_impl, meta=meta, batch_tile_cap=batch_tile_cap))


# --------------------------- deterministic parameters ---------------------------

def init_params(key, feat_in_dims, cat_in_dims, emb_dims, proj_dims, hidden_layers):
    assert len(hidden_layers) == 2 and hidden_layers[0] == hidden_layers[1], \
        "kernel is specialized to this 2-block config"
    D = proj_dims + emb_dims
    assert D != hidden_layers[0]

    kit = iter(jax.random.split(key, 64))

    def linear(in_dim, out_dim):
        bound = 1.0 / math.sqrt(in_dim)
        w = jax.random.uniform(next(kit), (out_dim, in_dim), jnp.float32, -bound, bound)
        b = jax.random.uniform(next(kit), (out_dim,), jnp.float32, -bound, bound)
        return w.T, b.reshape(1, out_dim)      # stored (in, out) for x @ W

    def bn(dim):
        gamma = jax.random.uniform(next(kit), (dim,), jnp.float32, 0.5, 1.5)
        beta = 0.1 * jax.random.normal(next(kit), (dim,), jnp.float32)
        mean = 0.1 * jax.random.normal(next(kit), (dim,), jnp.float32)
        var = jax.random.uniform(next(kit), (dim,), jnp.float32, 0.5, 1.5)
        return jnp.stack([gamma, beta, mean, var], axis=0)

    p = {}
    p["emb_tables"] = [jax.random.normal(next(kit), (n, emb_dims), jnp.float32)
                       for n in cat_in_dims]
    p["w_embl"], p["b_embl"] = linear(emb_dims, emb_dims)
    p["bn_emb"] = bn(emb_dims)
    p["w_feat"], p["b_feat"] = linear(feat_in_dims, proj_dims)
    p["bn_feat"] = bn(proj_dims)
    for name in ("q", "k", "v", "o"):
        p[f"w_{name}"], p[f"b_{name}"] = linear(D, D)
    H0, H1 = hidden_layers
    p["w_h0"], p["b_h0"] = linear(D, H0)
    p["bn_h0"] = bn(H0)
    p["w_p0"], p["b_p0"] = linear(D, H0)       # residual projection (D != H0)
    p["w_h1"], p["b_h1"] = linear(H0, H1)
    p["bn_h1"] = bn(H1)
    p["w_out"], p["b_out"] = linear(H1, 1)
    return p


# ------------------------------ pure-JAX reference ------------------------------

def reference_forward(cont, cat, params, attention_heads=4):
    gelu = lambda z: jax.nn.gelu(z, approximate=False)   # PyTorch-exact erf GELU
    tables = params["emb_tables"]
    embs = tables[0][cat[:, 0]]
    for i in range(1, len(tables)):
        embs = embs + tables[i][cat[:, i]]
    e = gelu(_bn_eval(embs @ params["w_embl"] + params["b_embl"], params["bn_emb"]))
    c = gelu(_bn_eval(cont @ params["w_feat"] + params["b_feat"], params["bn_feat"]))
    x = jnp.concatenate([c, e], axis=1)
    B, D = x.shape
    hd = D // attention_heads
    x3 = x[:, None, :]                                           # (B, 1, D)

    def heads(z):
        return z.reshape(B, 1, attention_heads, hd).transpose(0, 2, 1, 3)

    q = heads(x3 @ params["w_q"] + params["b_q"])
    k = heads(x3 @ params["w_k"] + params["b_k"])
    v = heads(x3 @ params["w_v"] + params["b_v"])
    s = jnp.einsum("bhqd,bhkd->bhqk", q, k) / math.sqrt(hd)
    p = jax.nn.softmax(s, axis=-1)
    a = jnp.einsum("bhqk,bhkd->bhqd", p, v).transpose(0, 2, 1, 3).reshape(B, 1, D)
    x = (a @ params["w_o"] + params["b_o"])[:, 0, :]

    h0 = gelu(_bn_eval(x @ params["w_h0"] + params["b_h0"], params["bn_h0"]))
    x = h0 + (x @ params["w_p0"] + params["b_p0"])
    h1 = gelu(_bn_eval(x @ params["w_h1"] + params["b_h1"], params["bn_h1"]))
    x = h1 + x
    return (x @ params["w_out"] + params["b_out"])[:, 0]


# ------------------------------------- main -------------------------------------

if __name__ == "__main__":
    # Small model dims; batch 256 => one full 256-row tile, single grid step.
    B = 256
    feat_in_dims = 16
    emb_dims = 16
    proj_dims = 16
    cat_in_dims = [8, 12, 10]
    hidden_layers = [48, 48]
    attention_heads = 4

    key = jax.random.PRNGKey(0)
    pkey, ckey, catkey = jax.random.split(key, 3)
    params = init_params(pkey, feat_in_dims, cat_in_dims, emb_dims, proj_dims,
                         hidden_layers)
    assert (proj_dims + emb_dims) % attention_heads == 0   # heads moot at seq_len==1

    cont_features = jax.random.normal(ckey, (B, feat_in_dims), jnp.float32)
    cat_features = jnp.stack(
        [jax.random.randint(jax.random.fold_in(catkey, i), (B,), 0, n)
         for i, n in enumerate(cat_in_dims)], axis=1)

    ref = reference_forward(cont_features, cat_features, params,
                            attention_heads=attention_heads)

    # Production path: fuse weights ONCE (hoisted), jit the forward, bf16 MXU
    # operands (native on v5e/v6e/v7x) with f32 accumulation.
    fused, meta = prepare_fused_params(params, matmul_dtype=jnp.bfloat16)
    fwd = make_forward(meta)
    out_bf16 = jax.block_until_ready(fwd(cont_features, cat_features,
                                         fused["w"], fused["b"]))
    # steady-state call: fused params + compilation are reused
    out_bf16 = jax.block_until_ready(fwd(cont_features, cat_features,
                                         fused["w"], fused["b"]))

    # f32-matmul debug knob: all structural fusions (BN fold, attention collapse,
    # block-diag input + embedding fold, h0/p0 fusion, lane padding) are exact;
    # remaining difference is tanh-vs-erf GELU and matmul rounding order.
    fused32, meta32 = prepare_fused_params(params, matmul_dtype=jnp.float32)
    fwd32 = make_forward(meta32)
    out_f32 = jax.block_until_ready(fwd32(cont_features, cat_features,
                                          fused32["w"], fused32["b"]))

    assert out_bf16.shape == (B,), out_bf16.shape
    assert bool(jnp.allclose(out_f32, ref, atol=1e-2, rtol=1e-2)), (out_f32, ref)
    # looser bound for bf16 input/weight rounding (~0.5% relative)
    assert bool(jnp.allclose(out_bf16, ref, atol=3e-2, rtol=3e-2)), (out_bf16, ref)
    print("KERNEL_OK")
</pallas_src>

<mosaic_0001>
module attributes {stable_mosaic.version = 11 : i64} {
  func.func @_forward_kernel(%arg0: i32, %arg1: memref<256x128xbf16, #tpu.memory_space<vmem>>, %arg2: memref<128x768xbf16, #tpu.memory_space<vmem>>, %arg3: memref<1x768xf32, #tpu.memory_space<vmem>>, %arg4: memref<256x128xf32, #tpu.memory_space<vmem>>) attributes {dimension_semantics = [#tpu.dimension_semantics<parallel>], iteration_bounds = array<i64: 1>, scalar_prefetch = 0 : i64, scratch_operands = 0 : i64, tpu.core_type = #tpu.core_type<tc>, window_params = [{transform_indices = @transform_0, window_bounds = array<i64: 256, 128>}, {pipeline_mode = #tpu.pipeline_mode<synchronous>, transform_indices = @transform_1, window_bounds = array<i64: 128, 768>}, {pipeline_mode = #tpu.pipeline_mode<synchronous>, transform_indices = @transform_2, window_bounds = array<i64: 1, 768>}, {transform_indices = @transform_3, window_bounds = array<i64: 256, 128>}]} {
    %c0 = arith.constant 0 : index
    %c0_0 = arith.constant 0 : index
    %0 = vector.load %arg1[%c0, %c0_0] : memref<256x128xbf16, #tpu.memory_space<vmem>>, vector<256x128xbf16>
    %c0_1 = arith.constant 0 : index
    %c0_2 = arith.constant 0 : index
    %1 = vector.load %arg2[%c0_1, %c0_2] : memref<128x768xbf16, #tpu.memory_space<vmem>>, vector<128x128xbf16>
    %cst = arith.constant dense<0.000000e+00> : vector<256x128xf32>
    %2 = tpu.matmul %0, %1, %cst {dimension_numbers = #tpu.dot_dimension_numbers<[1], [0], [0], [1], [0, 0, 1, 1], [], []>} : vector<256x128xbf16>, vector<128x128xbf16>, vector<256x128xf32> -> vector<256x128xf32>
    %c0_3 = arith.constant 0 : index
    %c0_4 = arith.constant 0 : index
    %3 = vector.load %arg3[%c0_3, %c0_4] : memref<1x768xf32, #tpu.memory_space<vmem>>, vector<1x128xf32>
    %4 = vector.broadcast %3 : vector<1x128xf32> to vector<256x128xf32>
    %5 = arith.addf %2, %4 : vector<256x128xf32>
    %cst_5 = arith.constant 5.000000e-01 : f32
    %6 = vector.broadcast %cst_5 : f32 to vector<256x128xf32>
    %7 = arith.mulf %6, %5 : vector<256x128xf32>
    %cst_6 = arith.constant 4.471500e-02 : f32
    %8 = vector.broadcast %cst_6 : f32 to vector<256x128xf32>
    %9 = arith.mulf %8, %5 : vector<256x128xf32>
    %10 = arith.mulf %9, %5 : vector<256x128xf32>
    %11 = arith.mulf %10, %5 : vector<256x128xf32>
    %12 = arith.addf %5, %11 : vector<256x128xf32>
    %cst_7 = arith.constant 0.797884583 : f32
    %13 = vector.broadcast %cst_7 : f32 to vector<256x128xf32>
    %14 = arith.mulf %13, %12 : vector<256x128xf32>
    %15 = math.tanh %14 : vector<256x128xf32>
    %cst_8 = arith.constant 1.000000e+00 : f32
    %16 = vector.broadcast %cst_8 : f32 to vector<256x128xf32>
    %17 = arith.addf %16, %15 : vector<256x128xf32>
    %18 = arith.mulf %7, %17 : vector<256x128xf32>
    %19 = arith.truncf %18 : vector<256x128xf32> to vector<256x128xbf16>
    %c0_9 = arith.constant 0 : index
    %c128 = arith.constant 128 : index
    %20 = vector.load %arg2[%c0_9, %c128] : memref<128x768xbf16, #tpu.memory_space<vmem>>, vector<128x128xbf16>
    %cst_10 = arith.constant dense<0.000000e+00> : vector<256x128xf32>
    %21 = tpu.matmul %19, %20, %cst_10 {dimension_numbers = #tpu.dot_dimension_numbers<[1], [0], [0], [1], [0, 0, 1, 1], [], []>} : vector<256x128xbf16>, vector<128x128xbf16>, vector<256x128xf32> -> vector<256x128xf32>
    %c0_11 = arith.constant 0 : index
    %c128_12 = arith.constant 128 : index
    %22 = vector.load %arg3[%c0_11, %c128_12] : memref<1x768xf32, #tpu.memory_space<vmem>>, vector<1x128xf32>
    %23 = vector.broadcast %22 : vector<1x128xf32> to vector<256x128xf32>
    %24 = arith.addf %21, %23 : vector<256x128xf32>
    %25 = arith.truncf %24 : vector<256x128xf32> to vector<256x128xbf16>
    %c0_13 = arith.constant 0 : index
    %c256 = arith.constant 256 : index
    %26 = vector.load %arg2[%c0_13, %c256] : memref<128x768xbf16, #tpu.memory_space<vmem>>, vector<128x256xbf16>
    %cst_14 = arith.constant dense<0.000000e+00> : vector<256x256xf32>
    %27 = tpu.matmul %25, %26, %cst_14 {dimension_numbers = #tpu.dot_dimension_numbers<[1], [0], [0], [1], [0, 0, 1, 1], [], []>} : vector<256x128xbf16>, vector<128x256xbf16>, vector<256x256xf32> -> vector<256x256xf32>
    %c0_15 = arith.constant 0 : index
    %c256_16 = arith.constant 256 : index
    %28 = vector.load %arg3[%c0_15, %c256_16] : memref<1x768xf32, #tpu.memory_space<vmem>>, vector<1x256xf32>
    %29 = vector.broadcast %28 : vector<1x256xf32> to vector<256x256xf32>
    %30 = arith.addf %27, %29 : vector<256x256xf32>
    %31 = vector.extract_strided_slice %30 {offsets = [0, 0], sizes = [256, 128], strides = [1, 1]} : vector<256x256xf32> to vector<256x128xf32>
    %cst_17 = arith.constant 5.000000e-01 : f32
    %32 = vector.broadcast %cst_17 : f32 to vector<256x128xf32>
    %33 = arith.mulf %32, %31 : vector<256x128xf32>
    %cst_18 = arith.constant 4.471500e-02 : f32
    %34 = vector.broadcast %cst_18 : f32 to vector<256x128xf32>
    %35 = arith.mulf %34, %31 : vector<256x128xf32>
    %36 = arith.mulf %35, %31 : vector<256x128xf32>
    %37 = arith.mulf %36, %31 : vector<256x128xf32>
    %38 = arith.addf %31, %37 : vector<256x128xf32>
    %cst_19 = arith.constant 0.797884583 : f32
    %39 = vector.broadcast %cst_19 : f32 to vector<256x128xf32>
    %40 = arith.mulf %39, %38 : vector<256x128xf32>
    %41 = math.tanh %40 : vector<256x128xf32>
    %cst_20 = arith.constant 1.000000e+00 : f32
    %42 = vector.broadcast %cst_20 : f32 to vector<256x128xf32>
    %43 = arith.addf %42, %41 : vector<256x128xf32>
    %44 = arith.mulf %33, %43 : vector<256x128xf32>
    %45 = vector.extract_strided_slice %30 {offsets = [0, 128], sizes = [256, 128], strides = [1, 1]} : vector<256x256xf32> to vector<256x128xf32>
    %46 = arith.addf %44, %45 : vector<256x128xf32>
    %47 = arith.truncf %46 : vector<256x128xf32> to vector<256x128xbf16>
    %c0_21 = arith.constant 0 : index
    %c512 = arith.constant 512 : index
    %48 = vector.load %arg2[%c0_21, %c512] : memref<128x768xbf16, #tpu.memory_space<vmem>>, vector<128x128xbf16>
    %cst_22 = arith.constant dense<0.000000e+00> : vector<256x128xf32>
    %49 = tpu.matmul %47, %48, %cst_22 {dimension_numbers = #tpu.dot_dimension_numbers<[1], [0], [0], [1], [0, 0, 1, 1], [], []>} : vector<256x128xbf16>, vector<128x128xbf16>, vector<256x128xf32> -> vector<256x128xf32>
    %c0_23 = arith.constant 0 : index
    %c512_24 = arith.constant 512 : index
    %50 = vector.load %arg3[%c0_23, %c512_24] : memref<1x768xf32, #tpu.memory_space<vmem>>, vector<1x128xf32>
    %51 = vector.broadcast %50 : vector<1x128xf32> to vector<256x128xf32>
    %52 = arith.addf %49, %51 : vector<256x128xf32>
    %cst_25 = arith.constant 5.000000e-01 : f32
    %53 = vector.broadcast %cst_25 : f32 to vector<256x128xf32>
    %54 = arith.mulf %53, %52 : vector<256x128xf32>
    %cst_26 = arith.constant 4.471500e-02 : f32
    %55 = vector.broadcast %cst_26 : f32 to vector<256x128xf32>
    %56 = arith.mulf %55, %52 : vector<256x128xf32>
    %57 = arith.mulf %56, %52 : vector<256x128xf32>
    %58 = arith.mulf %57, %52 : vector<256x128xf32>
    %59 = arith.addf %52, %58 : vector<256x128xf32>
    %cst_27 = arith.constant 0.797884583 : f32
    %60 = vector.broadcast %cst_27 : f32 to vector<256x128xf32>
    %61 = arith.mulf %60, %59 : vector<256x128xf32>
    %62 = math.tanh %61 : vector<256x128xf32>
    %cst_28 = arith.constant 1.000000e+00 : f32
    %63 = vector.broadcast %cst_28 : f32 to vector<256x128xf32>
    %64 = arith.addf %63, %62 : vector<256x128xf32>
    %65 = arith.mulf %54, %64 : vector<256x128xf32>
    %66 = arith.addf %65, %46 : vector<256x128xf32>
    %67 = arith.truncf %66 : vector<256x128xf32> to vector<256x128xbf16>
    %c0_29 = arith.constant 0 : index
    %c640 = arith.constant 640 : index
    %68 = vector.load %arg2[%c0_29, %c640] : memref<128x768xbf16, #tpu.memory_space<vmem>>, vector<128x128xbf16>
    %cst_30 = arith.constant dense<0.000000e+00> : vector<256x128xf32>
    %69 = tpu.matmul %67, %68, %cst_30 {dimension_numbers = #tpu.dot_dimension_numbers<[1], [0], [0], [1], [0, 0, 1, 1], [], []>} : vector<256x128xbf16>, vector<128x128xbf16>, vector<256x128xf32> -> vector<256x128xf32>
    %c0_31 = arith.constant 0 : index
    %c640_32 = arith.constant 640 : index
    %70 = vector.load %arg3[%c0_31, %c640_32] : memref<1x768xf32, #tpu.memory_space<vmem>>, vector<1x128xf32>
    %71 = vector.broadcast %70 : vector<1x128xf32> to vector<256x128xf32>
    %72 = arith.addf %69, %71 : vector<256x128xf32>
    %c0_33 = arith.constant 0 : index
    %c0_34 = arith.constant 0 : index
    %73 = vector.load %arg4[%c0_33, %c0_34] : memref<256x128xf32, #tpu.memory_space<vmem>>, vector<256x128xf32>
    tpu.vector_store %arg4[%c0_33, %c0_34], %72 {strides = array<i32>} : memref<256x128xf32, #tpu.memory_space<vmem>>, vector<256x128xf32>,
    return
  }
  func.func @transform_0(%arg0: i32) -> (i32, i32) {
    %c0_i32 = arith.constant 0 : i32
    %c0_i32_0 = arith.constant 0 : i32
    return %arg0, %c0_i32 : i32, i32
  }
  func.func @transform_1(%arg0: i32) -> (i32, i32) {
    %c0_i32 = arith.constant 0 : i32
    %c0_i32_0 = arith.constant 0 : i32
    %c0_i32_1 = arith.constant 0 : i32
    return %c0_i32, %c0_i32_0 : i32, i32
  }
  func.func @transform_2(%arg0: i32) -> (i32, i32) {
    %c0_i32 = arith.constant 0 : i32
    %c0_i32_0 = arith.constant 0 : i32
    %c0_i32_1 = arith.constant 0 : i32
    return %c0_i32, %c0_i32_0 : i32, i32
  }
  func.func @transform_3(%arg0: i32) -> (i32, i32) {
    %c0_i32 = arith.constant 0 : i32
    %c0_i32_0 = arith.constant 0 : i32
    return %arg0, %c0_i32 : i32, i32
  }
}

</mosaic_0001>

<bundles_post_ra>
// kernel: _forward_impl.1
= control target key start
LH: loop header
LB: loop body
LE: loop exit
PB: predicated region body
PF: predicated region fallthrough
CT: control target
= control target key end

     0   :  { %s4385_s1 = inlined_call_operand.vmem [shape: bf16[128,768], index: 1, kind: input, shape index: {}]   ;;  %s4386_s0 = inlined_call_operand.vmem [shape: bf16[256,128], index: 0, kind: input, shape index: {}]   ;;  %s4387_s2 = inlined_call_operand.vmem [shape: f32[1,768], index: 2, kind: input, shape index: {}]   ;;  %s4388_s3 = inlined_call_operand.vmem [shape: f32[256,128], index: 3, kind: output, shape index: {}]  }
   0x1   :  { %v2757_v0 = vld [vmem:[%s4385_s1] ss:$24 sps:$4 sm:$0xff]   ;;  %v2758_v1 = vld [vmem:[%s4385_s1 + $0x30] ss:$24 sps:$4 sm:$0xff]   ;;  %v2781_v24 = vld [vmem:[%s4385_s1 + $0x4] ss:$24 sps:$4 sm:$0xff]  }
   0x2   :  { %2564 = vmatprep.subr.bf16.mxu0 %v2757_v0  ;;  %v2759_v2 = vld [vmem:[%s4385_s1 + $0x60] ss:$24 sps:$4 sm:$0xff]   ;;  %v2760_v3 = vld [vmem:[%s4385_s1 + $0x90] ss:$24 sps:$4 sm:$0xff]   ;;  %2612 = vmatprep.subr.bf16.mxu1 %v2781_v24  ;;  %v2782_v25 = vld [vmem:[%s4385_s1 + $0x34] ss:$24 sps:$4 sm:$0xff]  }
   0x3   :  { %2565 = vmatpush3.bf16.msra.mxu0 %v2757_v0  ;;  %v2765_v4 = vld [vmem:[%s4386_s0] sm:$0xff]   ;;  %v2762_v6 = vld [vmem:[%s4385_s1 + $0xf0] ss:$24 sps:$4 sm:$0xff]   ;;  %v2768_v11 = vld [vmem:[%s4386_s0 + $0x18] sm:$0xff]   ;;  %2613 = vmatpush3.bf16.msra.mxu1 %v2781_v24 }
   0x4   :  { %2566 = vmatprep.subr.bf16.mxu0 %v2758_v1  ;;  %2580 = vmatprep.mubr.bf16.mxu0 %v2765_v4  ;;  %v2761_v5 = vld [vmem:[%s4385_s1 + $0xc0] ss:$24 sps:$4 sm:$0xff]   ;;  %v2764_v8 = vld [vmem:[%s4385_s1 + $0x150] ss:$24 sps:$4 sm:$0xff]   ;;  %v2783_v26 = vld [vmem:[%s4385_s1 + $0x64] ss:$24 sps:$4 sm:$0xff]  }
   0x5   :  { %v2763_v7 = vld [vmem:[%s4385_s1 + $0x120] ss:$24 sps:$4 sm:$0xff]   ;;  %v2766_v9 = vld [vmem:[%s4386_s0 + $0x8] sm:$0xff]   ;;  %v2767_v10 = vld [vmem:[%s4386_s0 + $0x10] sm:$0xff]   ;;  %2614 = vmatprep.subr.bf16.mxu1 %v2782_v25 }
   0x6   :  { %v2769_v12 = vld [vmem:[%s4386_s0 + $0x20] sm:$0xff]   ;;  %v2770_v13 = vld [vmem:[%s4386_s0 + $0x28] sm:$0xff]   ;;  %v2771_v14 = vld [vmem:[%s4386_s0 + $0x30] sm:$0xff]  }
   0x7   :  { %2567 = vmatpush3.bf16.msra.mxu0 %v2758_v1  ;;  %v2772_v15 = vld [vmem:[%s4386_s0 + $0x38] sm:$0xff]   ;;  %v2773_v16 = vld [vmem:[%s4386_s0 + $0x40] sm:$0xff]   ;;  %v2774_v17 = vld [vmem:[%s4386_s0 + $0x48] sm:$0xff]   ;;  %2615 = vmatpush3.bf16.msra.mxu1 %v2782_v25 }
   0x8   :  { %2568 = vmatprep.subr.bf16.mxu0 %v2759_v2  ;;  %v2775_v18 = vld [vmem:[%s4386_s0 + $0x50] sm:$0xff]   ;;  %v2776_v19 = vld [vmem:[%s4386_s0 + $0x58] sm:$0xff]   ;;  %v2777_v20 = vld [vmem:[%s4386_s0 + $0x60] sm:$0xff]   ;;  %2616 = vmatprep.subr.bf16.mxu1 %v2783_v26 }
   0x9   :  { %v2778_v21 = vld [vmem:[%s4386_s0 + $0x68] sm:$0xff]   ;;  %v2779_v22 = vld [vmem:[%s4386_s0 + $0x70] sm:$0xff]   ;;  %v2780_v23 = vld [vmem:[%s4386_s0 + $0x78] sm:$0xff]  }
   0xa   :  { %v2784_v27 = vld [vmem:[%s4385_s1 + $0x94] ss:$24 sps:$4 sm:$0xff]   ;;  %v2785_v28 = vld [vmem:[%s4385_s1 + $0xc4] ss:$24 sps:$4 sm:$0xff]   ;;  %v2789_v32 = vld [vmem:[%s4385_s1 + $0x8] ss:$24 sps:$4 sm:$0xff]  }
   0xb   :  { %2569 = vmatpush3.bf16.msra.mxu0 %v2759_v2  ;;  %2617 = vmatpush3.bf16.msra.mxu1 %v2783_v26  ;;  %v2786_v29 = vld [vmem:[%s4385_s1 + $0xf4] ss:$24 sps:$4 sm:$0xff]   ;;  %v2787_v30 = vld [vmem:[%s4385_s1 + $0x124] ss:$24 sps:$4 sm:$0xff]   ;;  %v2792_v35 = vld [vmem:[%s4385_s1 + $0x38] ss:$24 sps:$4 sm:$0xff]  }
   0xc   :  { %2570 = vmatprep.subr.bf16.mxu0 %v2760_v3  ;;  %2618 = vmatprep.subr.bf16.mxu1 %v2784_v27  ;;  %v2788_v31 = vld [vmem:[%s4385_s1 + $0x154] ss:$24 sps:$4 sm:$0xff]   ;;  %v2795_v37 = vld [vmem:[%s4385_s1 + $0x68] ss:$24 sps:$4 sm:$0xff]   ;;  %v2798_v39 = vld [vmem:[%s4385_s1 + $0x98] ss:$24 sps:$4 sm:$0xff]  }
   0xd   :  { %v2791_v33 = vld [vmem:[%s4385_s1 + $0xc] ss:$24 sps:$4 sm:$0xff]   ;;  %v2794_v34 = vld [vmem:[%s4385_s1 + $0x3c] ss:$24 sps:$4 sm:$0xff]   ;;  %v2801_v41 = vld [vmem:[%s4385_s1 + $0xc8] ss:$24 sps:$4 sm:$0xff]  }
   0xe   :  { %v2797_v36 = vld [vmem:[%s4385_s1 + $0x6c] ss:$24 sps:$4 sm:$0xff]   ;;  %v2800_v38 = vld [vmem:[%s4385_s1 + $0x9c] ss:$24 sps:$4 sm:$0xff]   ;;  %v2804_v43 = vld [vmem:[%s4385_s1 + $0xf8] ss:$24 sps:$4 sm:$0xff]  }
   0xf   :  { %2571 = vmatpush3.bf16.msra.mxu0 %v2760_v3  ;;  %2619 = vmatpush3.bf16.msra.mxu1 %v2784_v27  ;;  %v2803_v40 = vld [vmem:[%s4385_s1 + $0xcc] ss:$24 sps:$4 sm:$0xff]   ;;  %v2806_v42 = vld [vmem:[%s4385_s1 + $0xfc] ss:$24 sps:$4 sm:$0xff]   ;;  %v3177_v44 = vld [vmem:[%s4387_s2] ss:$0 sm:$0xff] }
  0x10   :  { %2572 = vmatprep.subr.bf16.mxu0 %v2761_v5  ;;  %2620 = vmatprep.subr.bf16.mxu1 %v2785_v28  ;;  %v2809_v45 = vld [vmem:[%s4385_s1 + $0x12c] ss:$24 sps:$4 sm:$0xff]   ;;  %v2807_v49 = vld [vmem:[%s4385_s1 + $0x128] ss:$24 sps:$4 sm:$0xff]   ;;  %v2812_v52 = vld [vmem:[%s4385_s1 + $0x15c] ss:$24 sps:$4 sm:$0xff]  }
  0x11   :  { %v2810_v60 = vld [vmem:[%s4385_s1 + $0x158] ss:$24 sps:$4 sm:$0xff]  }
  0x13   :  { %2573 = vmatpush3.bf16.msra.mxu0 %v2761_v5  ;;  %2621 = vmatpush3.bf16.msra.mxu1 %v2785_v28 }
  0x14   :  { %2574 = vmatprep.subr.bf16.mxu0 %v2762_v6  ;;  %2622 = vmatprep.subr.bf16.mxu1 %v2786_v29 }
  0x17   :  { %2575 = vmatpush3.bf16.msra.mxu0 %v2762_v6  ;;  %2623 = vmatpush3.bf16.msra.mxu1 %v2786_v29 }
  0x18   :  { %2576 = vmatprep.subr.bf16.mxu0 %v2763_v7  ;;  %2624 = vmatprep.subr.bf16.mxu1 %v2787_v30 }
  0x1b   :  { %2577 = vmatpush3.bf16.msra.mxu0 %v2763_v7  ;;  %2625 = vmatpush3.bf16.msra.mxu1 %v2787_v30 }
  0x1c   :  { %2578 = vmatprep.subr.bf16.mxu0 %v2764_v8  ;;  %2626 = vmatprep.subr.bf16.mxu1 %v2788_v31 }
  0x1f   :  { %2579 = vmatpush3.bf16.msra.mxu0 %v2764_v8  ;;  %2627 = vmatpush3.bf16.msra.mxu1 %v2788_v31 }
  0x20   :  { %1035 = vmatprep.subr.bf16.mxu0 %v2791_v33 }
  0x22   :  { %2581 = vmatmul.mubr.bf16.vlgmr.msra.gmra.mrb[0].mxu0 %v2766_v9 }
  0x23   :  { %2584 = vmatprep.mubr.bf16.mxu0 %v2767_v10  ;;  %1036 = vmatpush1.bf16.msra.mxu0 %v2789_v32 }
  0x24   :  { %1037 = vmatprep.subr.bf16.mxu0 %v2794_v34 }
  0x27   :  { %1038 = vmatpush1.bf16.msra.mxu0 %v2792_v35 }
  0x28   :  { %1039 = vmatprep.subr.bf16.mxu0 %v2797_v36 }
  0x2a   :  { %2585 = vmatmul.mubr.bf16.gmra.mrb[4].mxu0 %v2768_v11 }
  0x2b   :  { %2588 = vmatprep.mubr.bf16.mxu0 %v2769_v12  ;;  %1040 = vmatpush1.bf16.msra.mxu0 %v2795_v37 }
  0x2c   :  { %1041 = vmatprep.subr.bf16.mxu0 %v2800_v38 }
  0x2f   :  { %1042 = vmatpush1.bf16.msra.mxu0 %v2798_v39 }
  0x30   :  { %1043 = vmatprep.subr.bf16.mxu0 %v2803_v40 }
  0x32   :  { %2589 = vmatmul.mubr.bf16.gmra.mrb[8].mxu0 %v2770_v13 }
  0x33   :  { %2592 = vmatprep.mubr.bf16.mxu0 %v2771_v14  ;;  %1044 = vmatpush1.bf16.msra.mxu0 %v2801_v41 }
  0x34   :  { %1045 = vmatprep.subr.bf16.mxu0 %v2806_v42 }
  0x37   :  { %1046 = vmatpush1.bf16.msra.mxu0 %v2804_v43 }
  0x38   :  { %1047 = vmatprep.subr.bf16.mxu0 %v2809_v45 }
  0x3a   :  { %2593 = vmatmul.mubr.bf16.gmra.mrb[12].mxu0 %v2772_v15 }
  0x3b   :  { %2596 = vmatprep.mubr.bf16.mxu0 %v2773_v16  ;;  %1048 = vmatpush1.bf16.msra.mxu0 %v2807_v49 }
  0x3c   :  { %1049 = vmatprep.subr.bf16.mxu0 %v2812_v52 }
  0x3f   :  { %1050 = vmatpush1.bf16.msra.mxu0 %v2810_v60 }
  0x42   :  { %2597 = vmatmul.mubr.bf16.gmra.mrb[16].mxu0 %v2774_v17 }
  0x43   :  { %2600 = vmatprep.mubr.bf16.mxu0 %v2775_v18 }
  0x4a   :  { %2601 = vmatmul.mubr.bf16.gmra.mrb[20].mxu0 %v2776_v19 }
  0x4b   :  { %2604 = vmatprep.mubr.bf16.mxu0 %v2777_v20 }
  0x52   :  { %2605 = vmatmul.mubr.bf16.gmra.mrb[24].mxu0 %v2778_v21 }
  0x53   :  { %2608 = vmatprep.mubr.bf16.mxu0 %v2779_v22 }
  0x5a   :  { %2609 = vmatmul.mubr.bf16.gmra.mrb[28].mxu0 %v2780_v23 }
  0xf5   :  { %v2582_v46 = vpop.f32.mrb[0].mxu0 }
  0xf6   :  { %v257_v47 = vadd.f32 %v2582_v46, %v3177_v44  ;;  %v248_v48 = vpop.f32.mrb[1].mxu0 }
  0xf7   :  { %v3187_v50 = vadd.f32 %v3177_v44, %v248_v48  ;;  %v2583_v51 = vpop.f32.mrb[2].mxu0 }
  0xf8   :  { %v409_v53 = vmul.f32 0.044715, %v257_v47  ;;  %v260_v54 = vadd.f32 %v2583_v51, %v3177_v44  ;;  %v251_v55 = vpop.f32.mrb[3].mxu0  ;;  %v377_v35 = vmul.f32 0.5, %v257_v47 }
  0xf9   :  { %v407_v56 = vmul.f32 0.044715, %v3187_v50  ;;  %v3195_v57 = vadd.f32 %v3177_v44, %v251_v55  ;;  %v375_v43 = vmul.f32 0.5, %v3187_v50 }
  0xfa   :  { %v441_v58 = vmul.f32 %v409_v53, %v257_v47  ;;  %v410_v59 = vmul.f32 0.044715, %v260_v54  ;;  %v378_v45 = vmul.f32 0.5, %v260_v54 }
  0xfb   :  { %v408_v61 = vmul.f32 0.044715, %v3195_v57  ;;  %v439_v62 = vmul.f32 %v407_v56, %v3187_v50  ;;  %v376_v60 = vmul.f32 0.5, %v3195_v57 }
  0xfc   :  { %v473_v63 = vmul.f32 %v441_v58, %v257_v47  ;;  %v442_v0 = vmul.f32 %v410_v59, %v260_v54 }
  0xfd   :  { %v2586_v1 = vpop.f32.mrb[4].mxu0  ;;  %v440_v2 = vmul.f32 %v408_v61, %v3195_v57  ;;  %v471_v3 = vmul.f32 %v439_v62, %v3187_v50 }
  0xfe   :  { %v474_v4 = vmul.f32 %v442_v0, %v260_v54  ;;  %v3205_v5 = vadd.f32 %v2586_v1, %v3177_v44  ;;  %v264_v6 = vpop.f32.mrb[5].mxu0  ;;  %v505_v7 = vadd.f32 %v473_v63, %v257_v47 }
  0xff   :  { %v265_v8 = vadd.f32 %v3177_v44, %v264_v6  ;;  %v2587_v9 = vpop.f32.mrb[6].mxu0  ;;  %v472_v10 = vmul.f32 %v440_v2, %v3195_v57  ;;  %v503_v11 = vadd.f32 %v471_v3, %v3187_v50 }
 0x100   :  { %v413_v12 = vmul.f32 0.044715, %v3205_v5  ;;  %v3212_v13 = vadd.f32 %v2587_v9, %v3177_v44  ;;  %v267_v14 = vpop.f32.mrb[7].mxu0  ;;  %v506_v15 = vadd.f32 %v474_v4, %v260_v54  ;;  %v537_v16 = vmul.f32 0.7978846, %v505_v7 }
 0x101   :  { %v411_v17 = vmul.f32 0.044715, %v265_v8  ;;  %v268_v18 = vadd.f32 %v3177_v44, %v267_v14  ;;  %v504_v19 = vadd.f32 %v472_v10, %v3195_v57  ;;  %v535_v20 = vmul.f32 0.7978846, %v503_v11 }
 0x102   :  { %v445_v21 = vmul.f32 %v413_v12, %v3205_v5  ;;  %v414_v22 = vmul.f32 0.044715, %v3212_v13  ;;  %v538_v23 = vmul.f32 0.7978846, %v506_v15  ;;  %2829 = vtanh.f32 %v537_v16 }
 0x103   :  { %v443_v24 = vmul.f32 %v411_v17, %v265_v8  ;;  %v412_v25 = vmul.f32 0.044715, %v268_v18  ;;  %v536_v26 = vmul.f32 0.7978846, %v504_v19  ;;  %2831 = vtanh.f32 %v535_v20 }
 0x104   :  { %v477_v27 = vmul.f32 %v445_v21, %v3205_v5  ;;  %v446_v28 = vmul.f32 %v414_v22, %v3212_v13  ;;  %2833 = vtanh.f32 %v538_v23  ;;  %v3242_v61 = vmul.f32 0.5, %v265_v8 }
 0x105   :  { %v475_v29 = vmul.f32 %v443_v24, %v265_v8  ;;  %v444_v30 = vmul.f32 %v412_v25, %v268_v18  ;;  %v2590_v31 = vpop.f32.mrb[8].mxu0  ;;  %2835 = vtanh.f32 %v536_v26  ;;  %v3245_v2 = vmul.f32 0.5, %v268_v18 }
 0x106   :  { %v478_v32 = vmul.f32 %v446_v28, %v3212_v13  ;;  %v3222_v33 = vadd.f32 %v2590_v31, %v3177_v44  ;;  %v280_v34 = vpop.f32.mrb[9].mxu0  ;;  %v509_v40 = vadd.f32 %v477_v27, %v3205_v5  ;;  %v3249_v9 = vmul.f32 0.5, %v3205_v5 }
 0x107   :  { %v476_v36 = vmul.f32 %v444_v30, %v268_v18  ;;  %v3225_v37 = vadd.f32 %v3177_v44, %v280_v34  ;;  %v2591_v38 = vpop.f32.mrb[10].mxu0  ;;  %v507_v39 = vadd.f32 %v475_v29, %v265_v8  ;;  %v382_v5 = vmul.f32 0.5, %v3212_v13 }
 0x108   :  { %v3229_v41 = vadd.f32 %v2591_v38, %v3177_v44  ;;  %v283_v42 = vpop.f32.mrb[11].mxu0  ;;  %v510_v46 = vadd.f32 %v478_v32, %v3212_v13  ;;  %v417_v52 = vmul.f32 0.044715, %v3222_v33  ;;  %v541_v53 = vmul.f32 0.7978846, %v509_v40 }
 0x109   :  { %v415_v48 = vmul.f32 0.044715, %v3225_v37  ;;  %v3235_v47 = vadd.f32 %v3177_v44, %v283_v42  ;;  %v508_v49 = vadd.f32 %v476_v36, %v268_v18  ;;  %v539_v51 = vmul.f32 0.7978846, %v507_v39 }
 0x10a   :  { %v542_v55 = vmul.f32 0.7978846, %v510_v46  ;;  %v418_v54 = vmul.f32 0.044715, %v3229_v41  ;;  %v449_v8 = vmul.f32 %v417_v52, %v3222_v33  ;;  %v3269_v26 = vmul.f32 0.5, %v3222_v33 }
 0x10b   :  { %v447_v56 = vmul.f32 %v415_v48, %v3225_v37  ;;  %v416_v58 = vmul.f32 0.044715, %v3235_v47  ;;  %v540_v59 = vmul.f32 0.7978846, %v508_v49  ;;  %2837 = vtanh.f32 %v539_v51 }
 0x10c   :  { %v2830_v50 = vpop.eup %2829  ;;  %2839 = vtanh.f32 %v541_v53  ;;  %v450_v15 = vmul.f32 %v418_v54, %v3229_v41  ;;  %v481_v27 = vmul.f32 %v449_v8, %v3222_v33  ;;  %v3279_v40 = vmul.f32 0.5, %v3225_v37 }
 0x10d   :  { %v2832_v62 = vpop.eup %2831  ;;  %v448_v63 = vmul.f32 %v416_v58, %v3235_v47  ;;  %v2594_v0 = vpop.f32.mrb[12].mxu0  ;;  %v601_v1 = vadd.f32 1.0, %v2830_v50  ;;  %2841 = vtanh.f32 %v540_v59  ;;  %v479_v4 = vmul.f32 %v447_v56, %v3225_v37 }
 0x10e   :  { %v2834_v3 = vpop.eup %2833  ;;  %v296_v6 = vpop.f32.mrb[13].mxu0  ;;  %v599_v7 = vadd.f32 1.0, %v2832_v62  ;;  %2843 = vtanh.f32 %v542_v55  ;;  %v3254_v11 = vadd.f32 %v2594_v0, %v3177_v44  ;;  %v482_v36 = vmul.f32 %v450_v15, %v3229_v41 }
 0x10f   :  { %v2836_v57 = vpop.eup %2835  ;;  %v480_v10 = vmul.f32 %v448_v63, %v3235_v47  ;;  %v2595_v12 = vpop.f32.mrb[14].mxu0  ;;  %v602_v14 = vadd.f32 1.0, %v2834_v3  ;;  %v3258_v16 = vadd.f32 %v3177_v44, %v296_v6  ;;  %v633_v21 = vmul.f32 %v601_v1, %v377_v35 }
 0x110   :  { %v299_v17 = vpop.f32.mrb[15].mxu0  ;;  %v600_v18 = vadd.f32 1.0, %v2836_v57  ;;  %v3262_v19 = vadd.f32 %v2595_v12, %v3177_v44  ;;  %v631_v23 = vmul.f32 %v599_v7, %v375_v43  ;;  %v511_v25 = vadd.f32 %v479_v4, %v3225_v37 }
 0x111   :  { %v3265_v20 = vadd.f32 %v3177_v44, %v299_v17  ;;  %v634_v22 = vmul.f32 %v602_v14, %v378_v45  ;;  %v421_v28 = vmul.f32 0.044715, %v3254_v11  ;;  %v512_v29 = vadd.f32 %v480_v10, %v3235_v47 }
 0x112   :  { %v632_v24 = vmul.f32 %v600_v18, %v376_v60  ;;  %v419_v30 = vmul.f32 0.044715, %v3258_v16  ;;  %v543_v34 = vmul.f32 0.7978846, %v511_v25  ;;  %v422_v38 = vmul.f32 0.044715, %v3262_v19 }
 0x113   :  { %v664_v13 = vpack.c.bf16 %v634_v22, %v633_v21  ;;  %v420_v31 = vmul.f32 0.044715, %v3265_v20  ;;  %v544_v42 = vmul.f32 0.7978846, %v512_v29  ;;  %v3285_v49 = vmul.f32 0.5, %v3235_v47 }
 0x114   :  { %v663_v32 = vpack.c.bf16 %v632_v24, %v631_v23  ;;  %2845 = vtanh.f32 %v543_v34  ;;  %v453_v52 = vmul.f32 %v421_v28, %v3254_v11  ;;  %v451_v58 = vmul.f32 %v419_v30, %v3258_v16 }
 0x115   :  { %v2838_v35 = vpop.eup %2837  ;;  %v2598_v39 = vpop.f32.mrb[16].mxu0  ;;  %2847 = vtanh.f32 %v544_v42  ;;  %v452_v59 = vmul.f32 %v420_v31, %v3265_v20  ;;  %v454_v60 = vmul.f32 %v422_v38, %v3262_v19  ;;  %v513_v6 = vadd.f32 %v481_v27, %v3222_v33 }
 0x116   :  { %v2840_v43 = vpop.eup %2839  ;;  %2628 = vmatprep.mubr.bf16.mxu1 %v663_v32  ;;  %v3282_v45 = vadd.f32 %v2598_v39, %v3177_v44  ;;  %v312_v46 = vpop.f32.mrb[17].mxu0  ;;  %v603_v48 = vadd.f32 1.0, %v2838_v35  ;;  %v514_v10 = vadd.f32 %v482_v36, %v3229_v41  ;;  %v483_v12 = vmul.f32 %v451_v58, %v3258_v16 }
 0x117   :  { %v2842_v51 = vpop.eup %2841  ;;  %2629 = vmatmul.mubr.bf16.vlgmr.msra.gmra.mrb[0].mxu1 %v664_v13  ;;  %v3289_v53 = vadd.f32 %v3177_v44, %v312_v46  ;;  %v2599_v37 = vpop.f32.mrb[18].mxu0  ;;  %v605_v55 = vadd.f32 1.0, %v2840_v43  ;;  %v484_v14 = vmul.f32 %v452_v59, %v3265_v20  ;;  %v545_v17 = vmul.f32 0.7978846, %v513_v6 }
 0x118   :  { %v2844_v56 = vpop.eup %2843  ;;  %v3294_v50 = vadd.f32 %v2599_v37, %v3177_v44  ;;  %v315_v47 = vpop.f32.mrb[19].mxu0  ;;  %v604_v54 = vadd.f32 1.0, %v2842_v51  ;;  %v425_v62 = vmul.f32 0.044715, %v3282_v45  ;;  %v635_v3 = vmul.f32 %v603_v48, %v3242_v61 }
 0x119   :  { %v3299_v63 = vadd.f32 %v3177_v44, %v315_v47  ;;  %v606_v0 = vadd.f32 1.0, %v2844_v56  ;;  %v423_v1 = vmul.f32 0.044715, %v3289_v53  ;;  %v637_v57 = vmul.f32 %v605_v55, %v3249_v9 }
 0x11a   :  { %v636_v4 = vmul.f32 %v604_v54, %v3245_v2  ;;  %v426_v7 = vmul.f32 0.044715, %v3294_v50  ;;  %v457_v18 = vmul.f32 %v425_v62, %v3282_v45  ;;  %v546_v21 = vmul.f32 0.7978846, %v514_v10 }
 0x11b   :  { %v638_v8 = vmul.f32 %v606_v0, %v382_v5  ;;  %v424_v61 = vmul.f32 0.044715, %v3299_v63  ;;  %v485_v22 = vmul.f32 %v453_v52, %v3254_v11  ;;  %v455_v9 = vmul.f32 %v423_v1, %v3289_v53 }
 0x11c   :  { %v665_v15 = vpack.c.bf16 %v636_v4, %v635_v3  ;;  %v3315_v5 = vmul.f32 0.5, %v3229_v41  ;;  %2849 = vtanh.f32 %v545_v17  ;;  %v458_v24 = vmul.f32 %v426_v7, %v3294_v50 }
 0x11d   :  { %v666_v2 = vpack.c.bf16 %v638_v8, %v637_v57  ;;  %v2602_v33 = vpop.f32.mrb[20].mxu0  ;;  %2851 = vtanh.f32 %v546_v21  ;;  %v486_v29 = vmul.f32 %v454_v60, %v3262_v19  ;;  %v515_v31 = vadd.f32 %v483_v12, %v3258_v16 }
 0x11e   :  { %2632 = vmatprep.mubr.bf16.mxu1 %v665_v15  ;;  %v328_v23 = vpop.f32.mrb[21].mxu0  ;;  %v3319_v25 = vadd.f32 %v2602_v33, %v3177_v44  ;;  %v2846_v13 = vpop.eup %2845  ;;  %v516_v32 = vadd.f32 %v484_v14, %v3265_v20  ;;  %v3331_v35 = vmul.f32 %v457_v18, %v3282_v45  ;;  %v456_v36 = vmul.f32 %v424_v61, %v3299_v63 }
 0x11f   :  { %2633 = vmatmul.mubr.bf16.gmra.mrb[4].mxu1 %v666_v2  ;;  %v3322_v27 = vadd.f32 %v3177_v44, %v328_v23  ;;  %v2603_v28 = vpop.f32.mrb[22].mxu0  ;;  %v2848_v34 = vpop.eup %2847  ;;  %v607_v38 = vadd.f32 1.0, %v2846_v13  ;;  %v487_v42 = vmul.f32 %v455_v9, %v3289_v53  ;;  %v3339_v46 = vmul.f32 0.5, %v3258_v16 }
 0x120   :  { %v3326_v30 = vadd.f32 %v2603_v28, %v3177_v44  ;;  %v331_v41 = vpop.f32.mrb[23].mxu0  ;;  %v608_v43 = vadd.f32 1.0, %v2848_v34  ;;  %v547_v48 = vmul.f32 0.7978846, %v515_v31  ;;  %v490_v51 = vmul.f32 %v458_v24, %v3294_v50 }
 0x121   :  { %v3335_v39 = vadd.f32 %v3177_v44, %v331_v41  ;;  %v429_v52 = vmul.f32 0.044715, %v3319_v25  ;;  %v427_v37 = vmul.f32 0.044715, %v3322_v27  ;;  %v548_v55 = vmul.f32 0.7978846, %v516_v32 }
 0x122   :  { %v639_v56 = vmul.f32 %v607_v38, %v3279_v40  ;;  %v640_v58 = vmul.f32 %v608_v43, %v3285_v49  ;;  %v430_v59 = vmul.f32 0.044715, %v3326_v30  ;;  %2853 = vtanh.f32 %v547_v48 }
 0x123   :  { %v488_v47 = vmul.f32 %v456_v36, %v3299_v63  ;;  %v428_v16 = vmul.f32 0.044715, %v3335_v39  ;;  %v3350_v54 = vmul.f32 0.5, %v3265_v20  ;;  %2855 = vtanh.f32 %v548_v55 }
 0x124   :  { %v667_v62 = vpack.c.bf16 %v640_v58, %v639_v56  ;;  %v3353_v0 = vmul.f32 0.5, %v3254_v11  ;;  %v517_v40 = vadd.f32 %v485_v22, %v3254_v11  ;;  %v518_v49 = vadd.f32 %v486_v29, %v3262_v19 }
 0x125   :  { %v2606_v60 = vpop.f32.mrb[24].mxu0  ;;  %v461_v3 = vmul.f32 %v429_v52, %v3319_v25  ;;  %v459_v4 = vmul.f32 %v427_v37, %v3322_v27  ;;  %v462_v8 = vmul.f32 %v430_v59, %v3326_v30  ;;  %v519_v12 = vadd.f32 %v487_v42, %v3289_v53 }
 0x126   :  { %v344_v1 = vpop.f32.mrb[25].mxu0  ;;  %v3360_v6 = vadd.f32 %v2606_v60, %v3177_v44  ;;  %v2850_v57 = vpop.eup %2849  ;;  %2636 = vmatprep.mubr.bf16.mxu1 %v667_v62  ;;  %v549_v10 = vmul.f32 0.7978846, %v517_v40  ;;  %v550_v11 = vmul.f32 0.7978846, %v518_v49  ;;  %v460_v18 = vmul.f32 %v428_v16, %v3335_v39 }
 0x127   :  { %v3363_v20 = vadd.f32 %v3177_v44, %v344_v1  ;;  %v2607_v7 = vpop.f32.mrb[26].mxu0  ;;  %v2852_v15 = vpop.eup %2851  ;;  %v609_v17 = vadd.f32 1.0, %v2850_v57  ;;  %v520_v2 = vadd.f32 %v488_v47, %v3299_v63  ;;  %v551_v33 = vmul.f32 0.7978846, %v519_v12 }
 0x128   :  { %v347_v14 = vpop.f32.mrb[27].mxu0  ;;  %v433_v61 = vmul.f32 0.044715, %v3360_v6  ;;  %v610_v21 = vadd.f32 1.0, %v2852_v15  ;;  %2857 = vtanh.f32 %v549_v10  ;;  %v3371_v22 = vadd.f32 %v2607_v7, %v3177_v44 }
 0x129   :  { %v3374_v9 = vmul.f32 %v461_v3, %v3319_v25  ;;  %v491_v23 = vmul.f32 %v459_v4, %v3322_v27  ;;  %2859 = vtanh.f32 %v550_v11  ;;  %v431_v24 = vmul.f32 0.044715, %v3363_v20 }
 0x12a   :  { %v641_v28 = vmul.f32 %v609_v17, %v3269_v26  ;;  %v642_v13 = vmul.f32 %v610_v21, %v3315_v5  ;;  %v552_v29 = vmul.f32 0.7978846, %v520_v2  ;;  %2861 = vtanh.f32 %v551_v33 }
 0x12b   :  { %v3381_v41 = vmul.f32 %v462_v8, %v3326_v30  ;;  %v492_v31 = vmul.f32 %v460_v18, %v3335_v39  ;;  %v390_v32 = vmul.f32 0.5, %v3262_v19  ;;  %v465_v34 = vmul.f32 %v433_v61, %v3360_v6 }
 0x12c   :  { %v2854_v38 = vpop.eup %2853  ;;  %v668_v42 = vpack.c.bf16 %v642_v13, %v641_v28  ;;  %2863 = vtanh.f32 %v552_v29  ;;  %v434_v43 = vmul.f32 0.044715, %v3371_v22  ;;  %v521_v26 = vadd.f32 %v3331_v35, %v3282_v45 }
 0x12d   :  { %v2610_v36 = vpop.f32.mrb[28].mxu0  ;;  %v2856_v48 = vpop.eup %2855  ;;  %v611_v52 = vadd.f32 1.0, %v2854_v38  ;;  %v463_v37 = vmul.f32 %v431_v24, %v3363_v20  ;;  %v522_v55 = vadd.f32 %v490_v51, %v3294_v50  ;;  %v3392_v19 = vadd.f32 %v3177_v44, %v347_v14 }
 0x12e   :  { %v360_v5 = vpop.f32.mrb[29].mxu0  ;;  %2637 = vmatmul.mubr.bf16.gmra.mrb[8].mxu1 %v668_v42  ;;  %v612_v58 = vadd.f32 1.0, %v2856_v48  ;;  %v391_v59 = vmul.f32 0.5, %v3289_v53  ;;  %v553_v47 = vmul.f32 0.7978846, %v521_v26  ;;  %v392_v62 = vmul.f32 0.5, %v3299_v63 }
 0x12f   :  { %v2611_v56 = vpop.f32.mrb[30].mxu0  ;;  %v3396_v16 = vadd.f32 %v3177_v44, %v360_v5  ;;  %v643_v60 = vmul.f32 %v611_v52, %v3339_v46  ;;  %v554_v40 = vmul.f32 0.7978846, %v522_v55  ;;  %v432_v51 = vmul.f32 0.044715, %v3392_v19 }
 0x130   :  { %v363_v35 = vpop.f32.mrb[31].mxu0  ;;  %v644_v49 = vmul.f32 %v612_v58, %v3350_v54  ;;  %v3403_v1 = vmul.f32 %v465_v34, %v3360_v6  ;;  %v466_v3 = vmul.f32 %v434_v43, %v3371_v22  ;;  %2865 = vtanh.f32 %v553_v47 }
 0x131   :  { %v495_v53 = vmul.f32 %v463_v37, %v3363_v20  ;;  %2867 = vtanh.f32 %v554_v40  ;;  %v3408_v4 = vadd.f32 %v2610_v36, %v3177_v44  ;;  %v435_v46 = vmul.f32 0.044715, %v3396_v16 }
 0x132   :  { %v2858_v63 = vpop.eup %2857  ;;  %v669_v7 = vpack.c.bf16 %v644_v49, %v643_v60  ;;  %v464_v57 = vmul.f32 %v432_v51, %v3392_v19  ;;  %v523_v54 = vadd.f32 %v491_v23, %v3322_v27  ;;  %v524_v8 = vadd.f32 %v492_v31, %v3335_v39 }
 0x133   :  { %v2860_v10 = vpop.eup %2859  ;;  %v613_v11 = vadd.f32 1.0, %v2858_v63  ;;  %v393_v12 = vmul.f32 0.5, %v3282_v45  ;;  %v394_v14 = vmul.f32 0.5, %v3294_v50  ;;  %v3417_v15 = vadd.f32 %v2611_v56, %v3177_v44 }
 0x134   :  { %v2862_v17 = vpop.eup %2861  ;;  %2640 = vmatprep.mubr.bf16.mxu1 %v669_v7  ;;  %v614_v18 = vadd.f32 1.0, %v2860_v10  ;;  %v498_v61 = vmul.f32 %v466_v3, %v3371_v22  ;;  %v555_v2 = vmul.f32 0.7978846, %v523_v54  ;;  %v556_v21 = vmul.f32 0.7978846, %v524_v8 }
 0x135   :  { %v645_v33 = vmul.f32 %v613_v11, %v3353_v0  ;;  %v615_v23 = vadd.f32 1.0, %v2862_v17  ;;  %v437_v24 = vmul.f32 0.044715, %v3408_v4  ;;  %v467_v28 = vmul.f32 %v435_v46, %v3396_v16 }
 0x136   :  { %v2864_v45 = vpop.eup %2863  ;;  %v646_v13 = vmul.f32 %v614_v18, %v390_v32  ;;  %v496_v50 = vmul.f32 %v464_v57, %v3392_v19  ;;  %2869 = vtanh.f32 %v555_v2  ;;  %v525_v29 = vadd.f32 %v3374_v9, %v3319_v25 }
 0x137   :  { %v616_v31 = vadd.f32 1.0, %v2864_v45  ;;  %v647_v34 = vmul.f32 %v615_v23, %v391_v59  ;;  %2871 = vtanh.f32 %v556_v21  ;;  %v438_v36 = vmul.f32 0.044715, %v3417_v15 }
 0x138   :  { %v670_v38 = vpack.c.bf16 %v646_v13, %v645_v33  ;;  %v526_v0 = vadd.f32 %v3381_v41, %v3326_v30  ;;  %v557_v42 = vmul.f32 0.7978846, %v525_v29  ;;  %v3430_v43 = vadd.f32 %v3177_v44, %v363_v35 }
 0x139   :  { %v648_v32 = vmul.f32 %v616_v31, %v392_v62  ;;  %v469_v26 = vmul.f32 %v437_v24, %v3408_v4  ;;  %v499_v5 = vmul.f32 %v467_v28, %v3396_v16  ;;  %v395_v9 = vmul.f32 0.5, %v3322_v27 }
 0x13a   :  { %v2866_v48 = vpop.eup %2865  ;;  %2641 = vmatmul.mubr.bf16.gmra.mrb[12].mxu1 %v670_v38  ;;  %v558_v52 = vmul.f32 0.7978846, %v526_v0  ;;  %2873 = vtanh.f32 %v557_v42  ;;  %v436_v37 = vmul.f32 0.044715, %v3430_v43  ;;  %v527_v55 = vadd.f32 %v495_v53, %v3363_v20 }
 0x13b   :  { %v2868_v41 = vpop.eup %2867  ;;  %v671_v56 = vpack.c.bf16 %v648_v32, %v647_v34  ;;  %v617_v58 = vadd.f32 1.0, %v2866_v48  ;;  %v470_v44 = vmul.f32 %v438_v36, %v3417_v15  ;;  %v528_v59 = vadd.f32 %v496_v50, %v3392_v19 }
 0x13c   :  { %v618_v47 = vadd.f32 1.0, %v2868_v41  ;;  %2875 = vtanh.f32 %v558_v52  ;;  %v468_v35 = vmul.f32 %v436_v37, %v3430_v43  ;;  %v559_v27 = vmul.f32 0.7978846, %v527_v55 }
 0x13d   :  { %2644 = vmatprep.mubr.bf16.mxu1 %v671_v56  ;;  %v649_v60 = vmul.f32 %v617_v58, %v393_v12  ;;  %v396_v62 = vmul.f32 0.5, %v3335_v39  ;;  %v560_v40 = vmul.f32 0.7978846, %v528_v59  ;;  %v529_v51 = vadd.f32 %v3403_v1, %v3360_v6 }
 0x13e   :  { %v650_v49 = vmul.f32 %v618_v47, %v394_v14  ;;  %v500_v3 = vmul.f32 %v468_v35, %v3430_v43  ;;  %2877 = vtanh.f32 %v559_v27  ;;  %v530_v53 = vadd.f32 %v498_v61, %v3371_v22 }
 0x13f   :  { %v501_v46 = vmul.f32 %v469_v26, %v3408_v4  ;;  %v502_v63 = vmul.f32 %v470_v44, %v3417_v15  ;;  %2879 = vtanh.f32 %v560_v40  ;;  %v561_v7 = vmul.f32 0.7978846, %v529_v51 }
 0x140   :  { %v2870_v57 = vpop.eup %2869  ;;  %v672_v54 = vpack.c.bf16 %v650_v49, %v649_v60  ;;  %v562_v8 = vmul.f32 0.7978846, %v530_v53  ;;  %v531_v39 = vadd.f32 %v499_v5, %v3396_v16  ;;  %v532_v10 = vadd.f32 %v500_v3, %v3430_v43 }
 0x141   :  { %v2872_v1 = vpop.eup %2871  ;;  %v619_v11 = vadd.f32 1.0, %v2870_v57  ;;  %2881 = vtanh.f32 %v561_v7  ;;  %v397_v61 = vmul.f32 0.5, %v3319_v25  ;;  %v533_v2 = vadd.f32 %v501_v46, %v3408_v4 }
 0x142   :  { %2645 = vmatmul.mubr.bf16.gmra.mrb[16].mxu1 %v672_v54  ;;  %v620_v12 = vadd.f32 1.0, %v2872_v1  ;;  %2883 = vtanh.f32 %v562_v8  ;;  %v563_v14 = vmul.f32 0.7978846, %v531_v39  ;;  %v564_v17 = vmul.f32 0.7978846, %v532_v10 }
 0x143   :  { %v651_v18 = vmul.f32 %v619_v11, %v395_v9  ;;  %v534_v21 = vadd.f32 %v502_v63, %v3417_v15  ;;  %v398_v24 = vmul.f32 0.5, %v3326_v30  ;;  %v565_v45 = vmul.f32 0.7978846, %v533_v2  ;;  %v3465_v54 = vld [vmem:[%s4387_s2 + $0x1] ss:$0 sm:$0xff] }
 0x144   :  { %v2874_v33 = vpop.eup %2873  ;;  %v652_v23 = vmul.f32 %v620_v12, %v396_v62  ;;  %2885 = vtanh.f32 %v563_v14  ;;  %v399_v36 = vmul.f32 0.5, %v3363_v20  ;;  %v400_v38 = vmul.f32 0.5, %v3392_v19 }
 0x145   :  { %v621_v28 = vadd.f32 1.0, %v2874_v33  ;;  %2887 = vtanh.f32 %v564_v17  ;;  %v566_v13 = vmul.f32 0.7978846, %v534_v21  ;;  %v401_v26 = vmul.f32 0.5, %v3360_v6 }
 0x146   :  { %v2876_v50 = vpop.eup %2875  ;;  %v673_v29 = vpack.c.bf16 %v652_v23, %v651_v18  ;;  %2889 = vtanh.f32 %v565_v45  ;;  %v402_v52 = vmul.f32 0.5, %v3371_v22  ;;  %v403_v56 = vmul.f32 0.5, %v3396_v16 }
 0x147   :  { %v622_v31 = vadd.f32 1.0, %v2876_v50  ;;  %v653_v34 = vmul.f32 %v621_v28, %v397_v61  ;;  %2891 = vtanh.f32 %v566_v13  ;;  %v404_v59 = vmul.f32 0.5, %v3430_v43 }
 0x148   :  { %v2878_v25 = vpop.eup %2877  ;;  %2648 = vmatprep.mubr.bf16.mxu1 %v673_v29  ;;  %v405_v60 = vmul.f32 0.5, %v3408_v4  ;;  %v406_v51 = vmul.f32 0.5, %v3417_v15  ;;  %v3021_v57 = vmov 0  }
 0x149   :  { %v2880_v0 = vpop.eup %2879  ;;  %v654_v42 = vmul.f32 %v622_v31, %v398_v24  ;;  %v623_v30 = vadd.f32 1.0, %v2878_v25  ;;  %1067 = vmatprep.mubr.bf16.mxu0 %v3021_v57 }
 0x14a   :  { %v624_v32 = vadd.f32 1.0, %v2880_v0 }
 0x14b   :  { %v2882_v5 = vpop.eup %2881  ;;  %v674_v9 = vpack.c.bf16 %v654_v42, %v653_v34  ;;  %v655_v48 = vmul.f32 %v623_v30, %v399_v36 }
 0x14c   :  { %v2884_v37 = vpop.eup %2883  ;;  %v656_v55 = vmul.f32 %v624_v32, %v400_v38  ;;  %v625_v20 = vadd.f32 1.0, %v2882_v5 }
 0x14d   :  { %2649 = vmatmul.mubr.bf16.gmra.mrb[20].mxu1 %v674_v9  ;;  %v626_v41 = vadd.f32 1.0, %v2884_v37 }
 0x14e   :  { %v2886_v19 = vpop.eup %2885  ;;  %v675_v58 = vpack.c.bf16 %v656_v55, %v655_v48  ;;  %v657_v44 = vmul.f32 %v625_v20, %v401_v26 }
 0x14f   :  { %v2888_v47 = vpop.eup %2887  ;;  %v658_v35 = vmul.f32 %v626_v41, %v402_v52  ;;  %v627_v6 = vadd.f32 1.0, %v2886_v19 }
 0x150   :  { %2652 = vmatprep.mubr.bf16.mxu1 %v675_v58  ;;  %v628_v27 = vadd.f32 1.0, %v2888_v47  ;;  %v2890_v22 = vpop.eup %2889 }
 0x151   :  { %v676_v62 = vpack.c.bf16 %v658_v35, %v657_v44  ;;  %v659_v40 = vmul.f32 %v627_v6, %v403_v56  ;;  %v2892_v49 = vpop.eup %2891  ;;  %v629_v16 = vadd.f32 1.0, %v2890_v22 }
 0x152   :  { %v660_v3 = vmul.f32 %v628_v27, %v404_v59  ;;  %v630_v53 = vadd.f32 1.0, %v2892_v49 }
 0x153   :  { %v661_v63 = vmul.f32 %v629_v16, %v405_v60 }
 0x154   :  { %v677_v46 = vpack.c.bf16 %v660_v3, %v659_v40  ;;  %v662_v43 = vmul.f32 %v630_v53, %v406_v51 }
 0x155   :  { %2653 = vmatmul.mubr.bf16.gmra.mrb[24].mxu1 %v676_v62 }
 0x156   :  { %2656 = vmatprep.mubr.bf16.mxu1 %v677_v46  ;;  %v678_v7 = vpack.c.bf16 %v662_v43, %v661_v63 }
 0x15d   :  { %2657 = vmatmul.mubr.bf16.gmra.mrb[28].mxu1 %v678_v7 }
 0x1ea   :  { %v2630_v4 = vpop.f32.mrb[0].mxu1 }
 0x1eb   :  { %v784_v15 = vpop.f32.mrb[1].mxu1  ;;  %v793_v39 = vadd.f32 %v2630_v4, %v3465_v54 }
 0x1ec   :  { %v2631_v8 = vpop.f32.mrb[2].mxu1  ;;  %v785_v11 = vadd.f32 %v3465_v54, %v784_v15 }
 0x1ed   :  { %v796_v10 = vadd.f32 %v2631_v8, %v3465_v54  ;;  %v787_v1 = vpop.f32.mrb[3].mxu1 }
 0x1ee   :  { %v788_v12 = vadd.f32 %v3465_v54, %v787_v1 }
 0x1ef   :  { %v912_v14 = vpack.c.bf16 %v796_v10, %v793_v39 }
 0x1f0   :  { %v911_v17 = vpack.c.bf16 %v788_v12, %v785_v11 }
 0x1f2   :  { %v2634_v18 = vpop.f32.mrb[4].mxu1  ;;  %1068 = vmatmul.mubr.bf16.vlgmr.msra.gmra.mrb[32].mxu0 %v911_v17 }
 0x1f3   :  { %v800_v61 = vpop.f32.mrb[5].mxu1  ;;  %1077 = vmatprep.mubr.bf16.mxu0 %v3021_v57  ;;  %v809_v21 = vadd.f32 %v2634_v18, %v3465_v54 }
 0x1f4   :  { %v2635_v2 = vpop.f32.mrb[6].mxu1  ;;  %v801_v24 = vadd.f32 %v3465_v54, %v800_v61 }
 0x1f5   :  { %v812_v33 = vadd.f32 %v2635_v2, %v3465_v54  ;;  %v803_v23 = vpop.f32.mrb[7].mxu1 }
 0x1f6   :  { %v804_v28 = vadd.f32 %v3465_v54, %v803_v23 }
 0x1f7   :  { %v914_v45 = vpack.c.bf16 %v812_v33, %v809_v21 }
 0x1f8   :  { %v913_v13 = vpack.c.bf16 %v804_v28, %v801_v24 }
 0x1fa   :  { %1078 = vmatmul.mubr.bf16.gmra.mrb[36].mxu0 %v912_v14 }
 0x1fb   :  { %1087 = vmatprep.mubr.bf16.mxu0 %v3021_v57 }
 0x201   :  { %v2638_v50 = vpop.f32.mrb[8].mxu1 }
 0x202   :  { %1088 = vmatmul.mubr.bf16.gmra.mrb[40].mxu0 %v913_v13  ;;  %v816_v29 = vpop.f32.mrb[9].mxu1  ;;  %v825_v34 = vadd.f32 %v2638_v50, %v3465_v54  ;;  %v2815_v13 = vld [vmem:[%s4385_s1 + $0x70] ss:$24 sps:$4 sm:$0xff]   ;;  %v2816_v50 = vld [vmem:[%s4385_s1 + $0xa0] ss:$24 sps:$4 sm:$0xff]  }
 0x203   :  { %1097 = vmatprep.mubr.bf16.mxu0 %v3021_v57  ;;  %v2639_v31 = vpop.f32.mrb[10].mxu1  ;;  %v817_v38 = vadd.f32 %v3465_v54, %v816_v29  ;;  %v2817_v29 = vld [vmem:[%s4385_s1 + $0xd0] ss:$24 sps:$4 sm:$0xff]  }
 0x204   :  { %v828_v36 = vadd.f32 %v2639_v31, %v3465_v54  ;;  %v819_v25 = vpop.f32.mrb[11].mxu1  ;;  %v2819_v31 = vld [vmem:[%s4385_s1 + $0x130] ss:$24 sps:$4 sm:$0xff]  }
 0x205   :  { %v820_v0 = vadd.f32 %v3465_v54, %v819_v25 }
 0x206   :  { %v916_v42 = vpack.c.bf16 %v828_v36, %v825_v34  ;;  %v2820_v34 = vld [vmem:[%s4385_s1 + $0x160] ss:$24 sps:$4 sm:$0xff]   ;;  %v945_v36 = vlaneseq }
 0x207   :  { %v915_v30 = vpack.c.bf16 %v820_v0, %v817_v38  ;;  %v943_v0 = vld [vmem:[%s4387_s2 + $0x2] sm:$0x3] }
 0x208   :  { %v946_v25 = vshrl.u32 %v945_v36, 7 }
 0x20a   :  { %1098 = vmatmul.mubr.bf16.gmra.mrb[44].mxu0 %v914_v45  ;;  %v2814_v45 = vld [vmem:[%s4385_s1 + $0x40] ss:$24 sps:$4 sm:$0xff]   ;;  %v947_v38 = vsub.s32 0, %v946_v25 }
 0x20b   :  { %1107 = vmatprep.mubr.bf16.mxu0 %v3021_v57 }
 0x20d   :  { %v2642_v32 = vpop.f32.mrb[12].mxu1 }
 0x20e   :  { %v832_v26 = vpop.f32.mrb[13].mxu1  ;;  %v841_v9 = vadd.f32 %v2642_v32, %v3465_v54 }
 0x20f   :  { %v2643_v5 = vpop.f32.mrb[14].mxu1  ;;  %v833_v37 = vadd.f32 %v3465_v54, %v832_v26 }
 0x210   :  { %v844_v48 = vadd.f32 %v2643_v5, %v3465_v54  ;;  %v835_v52 = vpop.f32.mrb[15].mxu1 }
 0x211   :  { %v836_v55 = vadd.f32 %v3465_v54, %v835_v52 }
 0x212   :  { %1108 = vmatmul.mubr.bf16.gmra.mrb[48].mxu0 %v915_v30  ;;  %v918_v20 = vpack.c.bf16 %v844_v48, %v841_v9 }
 0x213   :  { %1117 = vmatprep.mubr.bf16.mxu0 %v3021_v57  ;;  %v917_v41 = vpack.c.bf16 %v836_v55, %v833_v37 }
 0x215   :  { %v2646_v56 = vpop.f32.mrb[16].mxu1 }
 0x216   :  { %v857_v19 = vadd.f32 %v2646_v56, %v3465_v54  ;;  %v848_v58 = vpop.f32.mrb[17].mxu1 }
 0x217   :  { %v849_v44 = vadd.f32 %v3465_v54, %v848_v58  ;;  %v2647_v59 = vpop.f32.mrb[18].mxu1 }
 0x218   :  { %v860_v47 = vadd.f32 %v2647_v59, %v3465_v54  ;;  %v851_v35 = vpop.f32.mrb[19].mxu1 }
 0x219   :  { %v852_v6 = vadd.f32 %v3465_v54, %v851_v35 }
 0x21a   :  { %1118 = vmatmul.mubr.bf16.gmra.mrb[52].mxu0 %v916_v42  ;;  %v920_v27 = vpack.c.bf16 %v860_v47, %v857_v19  ;;  %v3541_v42 = vrot.slane %v943_v0, %v947_v38 }
 0x21b   :  { %1127 = vmatprep.mubr.bf16.mxu0 %v3021_v57  ;;  %v919_v60 = vpack.c.bf16 %v852_v6, %v849_v44 }
 0x220   :  { %v2650_v22 = vpop.f32.mrb[20].mxu1 }
 0x221   :  { %v873_v62 = vadd.f32 %v2650_v22, %v3465_v54  ;;  %v864_v40 = vpop.f32.mrb[21].mxu1 }
 0x222   :  { %1128 = vmatmul.mubr.bf16.gmra.mrb[56].mxu0 %v917_v41  ;;  %v865_v51 = vadd.f32 %v3465_v54, %v864_v40  ;;  %v2651_v49 = vpop.f32.mrb[22].mxu1 }
 0x223   :  { %1137 = vmatprep.mubr.bf16.mxu0 %v3021_v57  ;;  %v876_v3 = vadd.f32 %v2651_v49, %v3465_v54  ;;  %v867_v16 = vpop.f32.mrb[23].mxu1 }
 0x224   :  { %v868_v53 = vadd.f32 %v3465_v54, %v867_v16 }
 0x225   :  { %v922_v46 = vpack.c.bf16 %v876_v3, %v873_v62 }
 0x226   :  { %v921_v63 = vpack.c.bf16 %v868_v53, %v865_v51 }
 0x228   :  { %v2654_v43 = vpop.f32.mrb[24].mxu1 }
 0x229   :  { %v889_v7 = vadd.f32 %v2654_v43, %v3465_v54  ;;  %v880_v4 = vpop.f32.mrb[25].mxu1  ;;  %v951_v43 = vsub.s32 1, %v946_v25 }
 0x22a   :  { %1138 = vmatmul.mubr.bf16.gmra.mrb[60].mxu0 %v918_v20  ;;  %v881_v15 = vadd.f32 %v3465_v54, %v880_v4  ;;  %v2655_v8 = vpop.f32.mrb[26].mxu1 }
 0x22b   :  { %1147 = vmatprep.mubr.bf16.mxu0 %v3021_v57  ;;  %v892_v39 = vadd.f32 %v2655_v8, %v3465_v54  ;;  %v883_v10 = vpop.f32.mrb[27].mxu1 }
 0x22c   :  { %v884_v1 = vadd.f32 %v3465_v54, %v883_v10 }
 0x22d   :  { %v924_v11 = vpack.c.bf16 %v892_v39, %v889_v7 }
 0x22e   :  { %v923_v12 = vpack.c.bf16 %v884_v1, %v881_v15 }
 0x230   :  { %v2658_v14 = vpop.f32.mrb[28].mxu1 }
 0x231   :  { %v905_v17 = vadd.f32 %v2658_v14, %v3465_v54  ;;  %v896_v18 = vpop.f32.mrb[29].mxu1  ;;  %v3576_v14 = vrot.slane %v943_v0, %v951_v43 }
 0x232   :  { %1148 = vmatmul.mubr.bf16.gmra.mrb[64].mxu0 %v919_v60  ;;  %v897_v61 = vadd.f32 %v3465_v54, %v896_v18  ;;  %v2659_v2 = vpop.f32.mrb[30].mxu1 }
 0x233   :  { %1157 = vmatprep.mubr.bf16.mxu0 %v3021_v57  ;;  %v908_v21 = vadd.f32 %v2659_v2, %v3465_v54  ;;  %v899_v33 = vpop.f32.mrb[31].mxu1 }
 0x234   :  { %v900_v23 = vadd.f32 %v3465_v54, %v899_v33  ;;  %v2813_v54 = vld [vmem:[%s4385_s1 + $0x10] ss:$24 sps:$4 sm:$0xff]  }
 0x235   :  { %v926_v24 = vpack.c.bf16 %v908_v21, %v905_v17  ;;  %2660 = vmatprep.subr.bf16.mxu1 %v2813_v54 }
 0x236   :  { %v925_v28 = vpack.c.bf16 %v900_v23, %v897_v61  ;;  %2661 = vmatpush3.bf16.msra.mxu1 %v2813_v54 }
 0x237   :  { %2662 = vmatprep.subr.bf16.mxu1 %v2814_v45 }
 0x23a   :  { %1158 = vmatmul.mubr.bf16.gmra.mrb[68].mxu0 %v920_v27  ;;  %2663 = vmatpush3.bf16.msra.mxu1 %v2814_v45 }
 0x23b   :  { %1167 = vmatprep.mubr.bf16.mxu0 %v3021_v57  ;;  %2664 = vmatprep.subr.bf16.mxu1 %v2815_v13 }
 0x23e   :  { %2665 = vmatpush3.bf16.msra.mxu1 %v2815_v13 }
 0x23f   :  { %2666 = vmatprep.subr.bf16.mxu1 %v2816_v50 }
 0x242   :  { %1168 = vmatmul.mubr.bf16.gmra.mrb[72].mxu0 %v921_v63  ;;  %2667 = vmatpush3.bf16.msra.mxu1 %v2816_v50 }
 0x243   :  { %1177 = vmatprep.mubr.bf16.mxu0 %v3021_v57  ;;  %2668 = vmatprep.subr.bf16.mxu1 %v2817_v29 }
 0x246   :  { %2669 = vmatpush3.bf16.msra.mxu1 %v2817_v29 }
 0x24a   :  { %1178 = vmatmul.mubr.bf16.gmra.mrb[76].mxu0 %v922_v46 }
 0x24b   :  { %1187 = vmatprep.mubr.bf16.mxu0 %v3021_v57 }
 0x252   :  { %1188 = vmatmul.mubr.bf16.gmra.mrb[80].mxu0 %v923_v12 }
 0x253   :  { %1197 = vmatprep.mubr.bf16.mxu0 %v3021_v57 }
 0x25a   :  { %1198 = vmatmul.mubr.bf16.gmra.mrb[84].mxu0 %v924_v11 }
 0x25b   :  { %1207 = vmatprep.mubr.bf16.mxu0 %v3021_v57 }
 0x262   :  { %1208 = vmatmul.mubr.bf16.gmra.mrb[88].mxu0 %v925_v28 }
 0x263   :  { %1217 = vmatprep.mubr.bf16.mxu0 %v3021_v57  ;;  %v2818_v57 = vld [vmem:[%s4385_s1 + $0x100] ss:$24 sps:$4 sm:$0xff]  }
 0x264   :  { %2670 = vmatprep.subr.bf16.mxu1 %v2818_v57 }
 0x265   :  { %2671 = vmatpush3.bf16.msra.mxu1 %v2818_v57 }
 0x266   :  { %2672 = vmatprep.subr.bf16.mxu1 %v2819_v31 }
 0x269   :  { %2673 = vmatpush3.bf16.msra.mxu1 %v2819_v31 }
 0x26a   :  { %1218 = vmatmul.mubr.bf16.gmra.mrb[92].mxu0 %v926_v24  ;;  %2674 = vmatprep.subr.bf16.mxu1 %v2820_v34 }
 0x26d   :  { %2675 = vmatpush3.bf16.msra.mxu1 %v2820_v34 }
 0x2c5   :  { %v1069_v30 = vpop.f32.mrb[32].mxu0 }
 0x2c6   :  { %v1070_v32 = vadd.f32 %v1069_v30, %v3541_v42  ;;  %v1071_v26 = vpop.f32.mrb[33].mxu0 }
 0x2c7   :  { %v1073_v5 = vpop.f32.mrb[34].mxu0  ;;  %v1072_v50 = vadd.f32 %v1071_v26, %v3576_v14 }
 0x2c8   :  { %v1260_v9 = vmul.f32 0.044715, %v1070_v32  ;;  %v1074_v48 = vadd.f32 %v1073_v5, %v3541_v42  ;;  %v1075_v52 = vpop.f32.mrb[35].mxu0  ;;  %v1228_v21 = vmul.f32 0.5, %v1070_v32 }
 0x2ca   :  { %v1292_v37 = vmul.f32 %v1260_v9, %v1070_v32  ;;  %v1261_v55 = vmul.f32 0.044715, %v1074_v48  ;;  %v1229_v57 = vmul.f32 0.5, %v1074_v48 }
 0x2cc   :  { %v1324_v20 = vmul.f32 %v1292_v37, %v1070_v32  ;;  %v1293_v41 = vmul.f32 %v1261_v55, %v1074_v48 }
 0x2cd   :  { %v1079_v56 = vpop.f32.mrb[36].mxu0 }
 0x2ce   :  { %v1356_v19 = vadd.f32 %v1324_v20, %v1070_v32  ;;  %v1325_v58 = vmul.f32 %v1293_v41, %v1074_v48  ;;  %v3546_v44 = vadd.f32 %v1079_v56, %v3541_v42  ;;  %v3548_v59 = vpop.f32.mrb[37].mxu0  ;;  %v1076_v32 = vadd.f32 %v1075_v52, %v3576_v14 }
 0x2cf   :  { %v1083_v47 = vpop.f32.mrb[38].mxu0 }
 0x2d0   :  { %v1388_v35 = vmul.f32 0.7978846, %v1356_v19  ;;  %v1357_v6 = vadd.f32 %v1325_v58, %v1074_v48  ;;  %v1262_v27 = vmul.f32 0.044715, %v3546_v44  ;;  %v3551_v60 = vpop.f32.mrb[39].mxu0  ;;  %v3554_v22 = vadd.f32 %v1083_v47, %v3541_v42 }
 0x2d1   :  { %v1230_v56 = vmul.f32 0.5, %v3546_v44 }
 0x2d2   :  { %2893 = vtanh.f32 %v1388_v35  ;;  %v1389_v62 = vmul.f32 0.7978846, %v1357_v6  ;;  %v1294_v40 = vmul.f32 %v1262_v27, %v3546_v44  ;;  %v1263_v51 = vmul.f32 0.044715, %v3554_v22 }
 0x2d4   :  { %2895 = vtanh.f32 %v1389_v62  ;;  %v1326_v49 = vmul.f32 %v1294_v40, %v3546_v44  ;;  %v1295_v3 = vmul.f32 %v1263_v51, %v3554_v22  ;;  %v1082_v40 = vadd.f32 %v3548_v59, %v3576_v14 }
 0x2d5   :  { %v1089_v16 = vpop.f32.mrb[40].mxu0  ;;  %v1086_v59 = vadd.f32 %v3551_v60, %v3576_v14 }
 0x2d6   :  { %v1358_v53 = vadd.f32 %v1326_v49, %v3546_v44  ;;  %v3562_v46 = vadd.f32 %v1089_v16, %v3541_v42  ;;  %v3564_v63 = vpop.f32.mrb[41].mxu0  ;;  %v1327_v7 = vmul.f32 %v1295_v3, %v3554_v22  ;;  %v1231_v3 = vmul.f32 0.5, %v3554_v22 }
 0x2d7   :  { %v1093_v4 = vpop.f32.mrb[42].mxu0 }
 0x2d8   :  { %v1390_v15 = vmul.f32 0.7978846, %v1358_v53  ;;  %v1264_v8 = vmul.f32 0.044715, %v3562_v46  ;;  %v3569_v39 = vadd.f32 %v1093_v4, %v3541_v42  ;;  %v3571_v10 = vpop.f32.mrb[43].mxu0  ;;  %v1359_v1 = vadd.f32 %v1327_v7, %v3554_v22 }
 0x2da   :  { %2897 = vtanh.f32 %v1390_v15  ;;  %v1296_v11 = vmul.f32 %v1264_v8, %v3562_v46  ;;  %v1265_v12 = vmul.f32 0.044715, %v3569_v39  ;;  %v1391_v17 = vmul.f32 0.7978846, %v1359_v1 }
 0x2dc   :  { %v2894_v18 = vpop.eup %2893  ;;  %v1328_v61 = vmul.f32 %v1296_v11, %v3562_v46  ;;  %v1297_v2 = vmul.f32 %v1265_v12, %v3569_v39  ;;  %2899 = vtanh.f32 %v1391_v17 }
 0x2dd   :  { %v1452_v33 = vadd.f32 1.0, %v2894_v18  ;;  %v1099_v23 = vpop.f32.mrb[44].mxu0 }
 0x2de   :  { %v2896_v24 = vpop.eup %2895  ;;  %v1360_v28 = vadd.f32 %v1328_v61, %v3562_v46  ;;  %v1329_v54 = vmul.f32 %v1297_v2, %v3569_v39  ;;  %v3583_v45 = vadd.f32 %v1099_v23, %v3541_v42  ;;  %v3585_v13 = vpop.f32.mrb[45].mxu0  ;;  %v1232_v2 = vmul.f32 0.5, %v3562_v46 }
 0x2df   :  { %v1484_v29 = vmul.f32 %v1452_v33, %v1228_v21  ;;  %v1453_v31 = vadd.f32 1.0, %v2896_v24  ;;  %v1103_v34 = vpop.f32.mrb[46].mxu0 }
 0x2e0   :  { %v1392_v36 = vmul.f32 0.7978846, %v1360_v28  ;;  %v1361_v25 = vadd.f32 %v1329_v54, %v3569_v39  ;;  %v1266_v38 = vmul.f32 0.044715, %v3583_v45  ;;  %v3590_v0 = vpop.f32.mrb[47].mxu0  ;;  %v3596_v9 = vadd.f32 %v1103_v34, %v3541_v42 }
 0x2e1   :  { %v3592_v30 = vadd.f32 %v1484_v29, %v1072_v50  ;;  %v1485_v5 = vmul.f32 %v1453_v31, %v1229_v57  ;;  %v1092_v28 = vadd.f32 %v3564_v63, %v3576_v14  ;;  %v1233_v57 = vmul.f32 0.5, %v3569_v39 }
 0x2e2   :  { %2901 = vtanh.f32 %v1392_v36  ;;  %v1393_v26 = vmul.f32 0.7978846, %v1361_v25  ;;  %v1298_v48 = vmul.f32 %v1266_v38, %v3583_v45  ;;  %v1267_v55 = vmul.f32 0.044715, %v3596_v9 }
 0x2e3   :  { %v3599_v37 = vadd.f32 %v1485_v5, %v1076_v32 }
 0x2e4   :  { %v2898_v20 = vpop.eup %2897  ;;  %2903 = vtanh.f32 %v1393_v26  ;;  %v1330_v41 = vmul.f32 %v1298_v48, %v3583_v45  ;;  %v1299_v52 = vmul.f32 %v1267_v55, %v3596_v9  ;;  %v1096_v26 = vadd.f32 %v3571_v10, %v3576_v14 }
 0x2e5   :  { %v1454_v19 = vadd.f32 1.0, %v2898_v20  ;;  %v1109_v58 = vpop.f32.mrb[48].mxu0  ;;  %v1548_v47 = vpack.c.bf16 %v3599_v37, %v3592_v30 }
 0x2e6   :  { %v1362_v35 = vadd.f32 %v1330_v41, %v3583_v45  ;;  %v3609_v6 = vadd.f32 %v1109_v58, %v3541_v42  ;;  %v3611_v27 = vpop.f32.mrb[49].mxu0  ;;  %v2900_v62 = vpop.eup %2899  ;;  %v1331_v44 = vmul.f32 %v1299_v52, %v3596_v9 }
 0x2e7   :  { %v1486_v51 = vmul.f32 %v1454_v19, %v1230_v56  ;;  %v1113_v49 = vpop.f32.mrb[50].mxu0  ;;  %2676 = vmatprep.mubr.bf16.mxu1 %v1548_v47  ;;  %v1455_v16 = vadd.f32 1.0, %v2900_v62  ;;  %v1234_v47 = vmul.f32 0.5, %v3583_v45 }
 0x2e8   :  { %v1394_v53 = vmul.f32 0.7978846, %v1362_v35  ;;  %v1268_v43 = vmul.f32 0.044715, %v3609_v6  ;;  %v1363_v4 = vadd.f32 %v1331_v44, %v3596_v9  ;;  %v3622_v15 = vadd.f32 %v1113_v49, %v3541_v42  ;;  %v3624_v8 = vpop.f32.mrb[51].mxu0 }
 0x2e9   :  { %v3618_v7 = vadd.f32 %v1486_v51, %v1082_v40  ;;  %v1487_v1 = vmul.f32 %v1455_v16, %v1231_v3  ;;  %v1102_v16 = vadd.f32 %v3585_v13, %v3576_v14 }
 0x2ea   :  { %2905 = vtanh.f32 %v1394_v53  ;;  %v1300_v22 = vmul.f32 %v1268_v43, %v3609_v6  ;;  %v1395_v11 = vmul.f32 0.7978846, %v1363_v4  ;;  %v1269_v12 = vmul.f32 0.044715, %v3622_v15 }
 0x2eb   :  { %v3630_v18 = vadd.f32 %v1487_v1, %v1086_v59  ;;  %v1235_v53 = vmul.f32 0.5, %v3596_v9 }
 0x2ec   :  { %v2902_v17 = vpop.eup %2901  ;;  %v1332_v61 = vmul.f32 %v1300_v22, %v3609_v6  ;;  %2907 = vtanh.f32 %v1395_v11  ;;  %v1301_v33 = vmul.f32 %v1269_v12, %v3622_v15 }
 0x2ed   :  { %v1456_v21 = vadd.f32 1.0, %v2902_v17  ;;  %v1119_v23 = vpop.f32.mrb[52].mxu0  ;;  %v1549_v24 = vpack.c.bf16 %v3630_v18, %v3618_v7  ;;  %v1106_v17 = vadd.f32 %v3590_v0, %v3576_v14 }
 0x2ee   :  { %v2904_v60 = vpop.eup %2903  ;;  %v1364_v54 = vadd.f32 %v1332_v61, %v3609_v6  ;;  %v3641_v50 = vadd.f32 %v1119_v23, %v3541_v42  ;;  %v3643_v29 = vpop.f32.mrb[53].mxu0  ;;  %v1333_v34 = vmul.f32 %v1301_v33, %v3622_v15 }
 0x2ef   :  { %v1488_v46 = vmul.f32 %v1456_v21, %v1232_v2  ;;  %v1457_v31 = vadd.f32 1.0, %v2904_v60  ;;  %v1123_v36 = vpop.f32.mrb[54].mxu0  ;;  %2677 = vmatmul.mubr.bf16.vlgmr.msra.gmra.mrb[32].mxu1 %v1549_v24  ;;  %v1236_v24 = vmul.f32 0.5, %v3609_v6 }
 0x2f0   :  { %v1396_v25 = vmul.f32 0.7978846, %v1364_v54  ;;  %v1270_v38 = vmul.f32 0.044715, %v3641_v50  ;;  %v3649_v32 = vadd.f32 %v1123_v36, %v3541_v42  ;;  %v3651_v63 = vpop.f32.mrb[55].mxu0  ;;  %v1365_v39 = vadd.f32 %v1333_v34, %v3622_v15 }
 0x2f1   :  { %v3653_v5 = vadd.f32 %v1488_v46, %v1092_v28  ;;  %v1489_v48 = vmul.f32 %v1457_v31, %v1233_v57 }
 0x2f2   :  { %2909 = vtanh.f32 %v1396_v25  ;;  %v1302_v55 = vmul.f32 %v1270_v38, %v3641_v50  ;;  %v1271_v20 = vmul.f32 0.044715, %v3649_v32  ;;  %v1397_v56 = vmul.f32 0.7978846, %v1365_v39 }
 0x2f3   :  { %v3660_v41 = vadd.f32 %v1489_v48, %v1096_v26  ;;  %v1112_v25 = vadd.f32 %v3611_v27, %v3576_v14  ;;  %v1237_v48 = vmul.f32 0.5, %v3622_v15  ;;  %v1116_v27 = vadd.f32 %v3624_v8, %v3576_v14 }
 0x2f4   :  { %v2906_v19 = vpop.eup %2905  ;;  %v1334_v52 = vmul.f32 %v1302_v55, %v3641_v50  ;;  %v1303_v58 = vmul.f32 %v1271_v20, %v3649_v32  ;;  %2911 = vtanh.f32 %v1397_v56 }
 0x2f5   :  { %v1458_v35 = vadd.f32 1.0, %v2906_v19  ;;  %v1129_v10 = vpop.f32.mrb[56].mxu0  ;;  %v1550_v62 = vpack.c.bf16 %v3660_v41, %v3653_v5 }
 0x2f6   :  { %v1366_v40 = vadd.f32 %v1334_v52, %v3641_v50  ;;  %v1335_v51 = vmul.f32 %v1303_v58, %v3649_v32  ;;  %v3670_v44 = vadd.f32 %v1129_v10, %v3541_v42  ;;  %v3672_v49 = vpop.f32.mrb[57].mxu0  ;;  %v2908_v3 = vpop.eup %2907 }
 0x2f7   :  { %v1490_v45 = vmul.f32 %v1458_v35, %v1234_v47  ;;  %v1133_v43 = vpop.f32.mrb[58].mxu0  ;;  %2680 = vmatprep.mubr.bf16.mxu1 %v1550_v62  ;;  %v1459_v4 = vadd.f32 1.0, %v2908_v3  ;;  %v1238_v3 = vmul.f32 0.5, %v3641_v50 }
 0x2f8   :  { %v1398_v59 = vmul.f32 0.7978846, %v1366_v40  ;;  %v1367_v1 = vadd.f32 %v1335_v51, %v3649_v32  ;;  %v1272_v22 = vmul.f32 0.044715, %v3670_v44  ;;  %v3679_v11 = vpop.f32.mrb[59].mxu0  ;;  %v3686_v13 = vadd.f32 %v1133_v43, %v3541_v42 }
 0x2f9   :  { %v3681_v12 = vadd.f32 %v1490_v45, %v1102_v16  ;;  %v1491_v61 = vmul.f32 %v1459_v4, %v1235_v53  ;;  %v1122_v43 = vadd.f32 %v3643_v29, %v3576_v14 }
 0x2fa   :  { %2913 = vtanh.f32 %v1398_v59  ;;  %v1399_v9 = vmul.f32 0.7978846, %v1367_v1  ;;  %v1304_v2 = vmul.f32 %v1272_v22, %v3670_v44  ;;  %v1273_v21 = vmul.f32 0.044715, %v3686_v13 }
 0x2fb   :  { %v3690_v23 = vadd.f32 %v1491_v61, %v1106_v17  ;;  %v1239_v17 = vmul.f32 0.5, %v3649_v32 }
 0x2fc   :  { %v2910_v33 = vpop.eup %2909  ;;  %2915 = vtanh.f32 %v1399_v9  ;;  %v1336_v60 = vmul.f32 %v1304_v2, %v3670_v44  ;;  %v1305_v0 = vmul.f32 %v1273_v21, %v3686_v13 }
 0x2fd   :  { %v1460_v28 = vadd.f32 1.0, %v2910_v33  ;;  %v1139_v54 = vpop.f32.mrb[60].mxu0  ;;  %v1551_v34 = vpack.c.bf16 %v3690_v23, %v3681_v12 }
 0x2fe   :  { %v1368_v46 = vadd.f32 %v1336_v60, %v3670_v44  ;;  %v3697_v57 = vadd.f32 %v1139_v54, %v3541_v42  ;;  %v3699_v31 = vpop.f32.mrb[61].mxu0  ;;  %v2912_v36 = vpop.eup %2911  ;;  %v1337_v6 = vmul.f32 %v1305_v0, %v3686_v13 }
 0x2ff   :  { %v1492_v38 = vmul.f32 %v1460_v28, %v1236_v24  ;;  %v1143_v26 = vpop.f32.mrb[62].mxu0  ;;  %v1461_v39 = vadd.f32 1.0, %v2912_v36  ;;  %2681 = vmatmul.mubr.bf16.gmra.mrb[36].mxu1 %v1551_v34  ;;  %v1126_v28 = vadd.f32 %v3651_v63, %v3576_v14 }
 0x300   :  { %v1400_v55 = vmul.f32 0.7978846, %v1368_v46  ;;  %v1274_v20 = vmul.f32 0.044715, %v3697_v57  ;;  %v1369_v19 = vadd.f32 %v1337_v6, %v3686_v13  ;;  %v3712_v52 = vadd.f32 %v1143_v26, %v3541_v42  ;;  %v3714_v58 = vpop.f32.mrb[63].mxu0 }
 0x301   :  { %v3708_v56 = vadd.f32 %v1492_v38, %v1112_v25  ;;  %v1493_v47 = vmul.f32 %v1461_v39, %v1237_v48  ;;  %v1240_v26 = vmul.f32 0.5, %v3670_v44 }
 0x302   :  { %2917 = vtanh.f32 %v1400_v55  ;;  %v1306_v15 = vmul.f32 %v1274_v20, %v3697_v57  ;;  %v1401_v35 = vmul.f32 0.7978846, %v1369_v19  ;;  %v1275_v10 = vmul.f32 0.044715, %v3712_v52 }
 0x303   :  { %v3720_v40 = vadd.f32 %v1493_v47, %v1116_v27 }
 0x304   :  { %v2914_v62 = vpop.eup %2913  ;;  %v1338_v51 = vmul.f32 %v1306_v15, %v3697_v57  ;;  %2919 = vtanh.f32 %v1401_v35  ;;  %v1307_v45 = vmul.f32 %v1275_v10, %v3712_v52  ;;  %v1132_v15 = vadd.f32 %v3672_v49, %v3576_v14 }
 0x305   :  { %v1462_v16 = vadd.f32 1.0, %v2914_v62  ;;  %v1149_v53 = vpop.f32.mrb[64].mxu0  ;;  %v1552_v22 = vpack.c.bf16 %v3720_v40, %v3708_v56  ;;  %v1241_v35 = vmul.f32 0.5, %v3686_v13 }
 0x306   :  { %v2916_v8 = vpop.eup %2915  ;;  %v1370_v4 = vadd.f32 %v1338_v51, %v3697_v57  ;;  %v3729_v59 = vadd.f32 %v1149_v53, %v3541_v42  ;;  %v3731_v1 = vpop.f32.mrb[65].mxu0  ;;  %v1339_v9 = vmul.f32 %v1307_v45, %v3712_v52 }
 0x307   :  { %v1494_v50 = vmul.f32 %v1462_v16, %v1238_v3  ;;  %v1463_v61 = vadd.f32 1.0, %v2916_v8  ;;  %v1153_v2 = vpop.f32.mrb[66].mxu0  ;;  %2684 = vmatprep.mubr.bf16.mxu1 %v1552_v22  ;;  %v1136_v8 = vadd.f32 %v3679_v11, %v3576_v14 }
 0x308   :  { %v1402_v21 = vmul.f32 0.7978846, %v1370_v4  ;;  %v1276_v29 = vmul.f32 0.044715, %v3729_v59  ;;  %v3739_v33 = vadd.f32 %v1153_v2, %v3541_v42  ;;  %v3741_v60 = vpop.f32.mrb[67].mxu0  ;;  %v1371_v32 = vadd.f32 %v1339_v9, %v3712_v52 }
 0x309   :  { %v3743_v24 = vadd.f32 %v1494_v50, %v1122_v43  ;;  %v1495_v0 = vmul.f32 %v1463_v61, %v1239_v17  ;;  %v1242_v9 = vmul.f32 0.5, %v3697_v57 }
 0x30a   :  { %2921 = vtanh.f32 %v1402_v21  ;;  %v1308_v54 = vmul.f32 %v1276_v29, %v3729_v59  ;;  %v1277_v46 = vmul.f32 0.044715, %v3739_v33  ;;  %v1403_v36 = vmul.f32 0.7978846, %v1371_v32 }
 0x30b   :  { %v3750_v34 = vadd.f32 %v1495_v0, %v1126_v28 }
 0x30c   :  { %v2918_v25 = vpop.eup %2917  ;;  %v1340_v38 = vmul.f32 %v1308_v54, %v3729_v59  ;;  %v1309_v6 = vmul.f32 %v1277_v46, %v3739_v33  ;;  %2923 = vtanh.f32 %v1403_v36  ;;  %v1142_v46 = vadd.f32 %v3699_v31, %v3576_v14 }
 0x30d   :  { %v1464_v48 = vadd.f32 1.0, %v2918_v25  ;;  %v1159_v63 = vpop.f32.mrb[68].mxu0  ;;  %v1553_v39 = vpack.c.bf16 %v3750_v34, %v3743_v24  ;;  %v1146_v31 = vadd.f32 %v3714_v58, %v3576_v14 }
 0x30e   :  { %v1372_v55 = vadd.f32 %v1340_v38, %v3729_v59  ;;  %v1341_v20 = vmul.f32 %v1309_v6, %v3739_v33  ;;  %v3760_v19 = vadd.f32 %v1159_v63, %v3541_v42  ;;  %v3762_v27 = vpop.f32.mrb[69].mxu0  ;;  %v2920_v47 = vpop.eup %2919  ;;  %v1243_v38 = vmul.f32 0.5, %v3712_v52 }
 0x30f   :  { %v1496_v44 = vmul.f32 %v1464_v48, %v1240_v26  ;;  %v1163_v10 = vpop.f32.mrb[70].mxu0  ;;  %2685 = vmatmul.mubr.bf16.gmra.mrb[40].mxu1 %v1553_v39  ;;  %v1465_v62 = vadd.f32 1.0, %v2920_v47 }
 0x310   :  { %v1404_v51 = vmul.f32 0.7978846, %v1372_v55  ;;  %v1373_v3 = vadd.f32 %v1341_v20, %v3739_v33  ;;  %v1278_v16 = vmul.f32 0.044715, %v3760_v19  ;;  %v3769_v45 = vpop.f32.mrb[71].mxu0  ;;  %v3776_v49 = vadd.f32 %v1163_v10, %v3541_v42 }
 0x311   :  { %v3771_v53 = vadd.f32 %v1496_v44, %v1132_v15  ;;  %v1497_v43 = vmul.f32 %v1465_v62, %v1241_v35 }
 0x312   :  { %2925 = vtanh.f32 %v1404_v51  ;;  %v1405_v13 = vmul.f32 0.7978846, %v1373_v3  ;;  %v1310_v4 = vmul.f32 %v1278_v16, %v3760_v19  ;;  %v1279_v22 = vmul.f32 0.044715, %v3776_v49 }
 0x313   :  { %v3780_v17 = vadd.f32 %v1497_v43, %v1136_v8  ;;  %v1244_v51 = vmul.f32 0.5, %v3729_v59  ;;  %v1152_v43 = vadd.f32 %v3731_v1, %v3576_v14 }
 0x314   :  { %v2922_v50 = vpop.eup %2921  ;;  %2927 = vtanh.f32 %v1405_v13  ;;  %v1342_v61 = vmul.f32 %v1310_v4, %v3760_v19  ;;  %v1311_v11 = vmul.f32 %v1279_v22, %v3776_v49 }
 0x315   :  { %v1466_v2 = vadd.f32 1.0, %v2922_v50  ;;  %v1169_v21 = vpop.f32.mrb[72].mxu0  ;;  %v1554_v32 = vpack.c.bf16 %v3780_v17, %v3771_v53 }
 0x316   :  { %v1374_v29 = vadd.f32 %v1342_v61, %v3760_v19  ;;  %v3787_v28 = vadd.f32 %v1169_v21, %v3541_v42  ;;  %v3789_v0 = vpop.f32.mrb[73].mxu0  ;;  %v2924_v54 = vpop.eup %2923  ;;  %v1343_v57 = vmul.f32 %v1311_v11, %v3776_v49  ;;  %v1245_v61 = vmul.f32 0.5, %v3739_v33 }
 0x317   :  { %v1498_v36 = vmul.f32 %v1466_v2, %v1242_v9  ;;  %v1173_v25 = vpop.f32.mrb[74].mxu0  ;;  %v1467_v6 = vadd.f32 1.0, %v2924_v54  ;;  %2688 = vmatprep.mubr.bf16.mxu1 %v1554_v32 }
 0x318   :  { %v1406_v26 = vmul.f32 0.7978846, %v1374_v29  ;;  %v1280_v48 = vmul.f32 0.044715, %v3787_v28  ;;  %v1375_v39 = vadd.f32 %v1343_v57, %v3776_v49  ;;  %v3802_v55 = vadd.f32 %v1173_v25, %v3541_v42  ;;  %v3804_v20 = vpop.f32.mrb[75].mxu0 }
 0x319   :  { %v3798_v63 = vadd.f32 %v1498_v36, %v1142_v46  ;;  %v1499_v47 = vmul.f32 %v1467_v6, %v1243_v38  ;;  %v1156_v46 = vadd.f32 %v3741_v60, %v3576_v14 }
 0x31a   :  { %2929 = vtanh.f32 %v1406_v26  ;;  %v1312_v52 = vmul.f32 %v1280_v48, %v3787_v28  ;;  %v1407_v15 = vmul.f32 0.7978846, %v1375_v39  ;;  %v1281_v44 = vmul.f32 0.044715, %v3802_v55 }
 0x31b   :  { %v3810_v10 = vadd.f32 %v1499_v47, %v1146_v31  ;;  %v1246_v31 = vmul.f32 0.5, %v3760_v19 }
 0x31c   :  { %v2926_v35 = vpop.eup %2925  ;;  %v1344_v62 = vmul.f32 %v1312_v52, %v3787_v28  ;;  %2931 = vtanh.f32 %v1407_v15  ;;  %v1313_v16 = vmul.f32 %v1281_v44, %v3802_v55 }
 0x31d   :  { %v1468_v3 = vadd.f32 1.0, %v2926_v35  ;;  %v1179_v8 = vpop.f32.mrb[76].mxu0  ;;  %v1555_v50 = vpack.c.bf16 %v3810_v10, %v3798_v63 }
 0x31e   :  { %v2928_v58 = vpop.eup %2927  ;;  %v1376_v13 = vadd.f32 %v1344_v62, %v3787_v28  ;;  %v3819_v4 = vadd.f32 %v1179_v8, %v3541_v42  ;;  %v3821_v22 = vpop.f32.mrb[77].mxu0  ;;  %v1345_v2 = vmul.f32 %v1313_v16, %v3802_v55  ;;  %v1247_v16 = vmul.f32 0.5, %v3776_v49 }
 0x31f   :  { %v1500_v59 = vmul.f32 %v1468_v3, %v1244_v51  ;;  %v1469_v9 = vadd.f32 1.0, %v2928_v58  ;;  %v1183_v11 = vpop.f32.mrb[78].mxu0  ;;  %2689 = vmatmul.mubr.bf16.gmra.mrb[44].mxu1 %v1555_v50  ;;  %v1162_v3 = vadd.f32 %v3762_v27, %v3576_v14 }
 0x320   :  { %v1408_v21 = vmul.f32 0.7978846, %v1376_v13  ;;  %v1282_v1 = vmul.f32 0.044715, %v3819_v4  ;;  %v3829_v29 = vadd.f32 %v1183_v11, %v3541_v42  ;;  %v3831_v32 = vpop.f32.mrb[79].mxu0  ;;  %v1377_v33 = vadd.f32 %v1345_v2, %v3802_v55 }
 0x321   :  { %v3833_v54 = vadd.f32 %v1500_v59, %v1152_v43  ;;  %v1501_v36 = vmul.f32 %v1469_v9, %v1245_v61  ;;  %v1166_v9 = vadd.f32 %v3769_v45, %v3576_v14 }
 0x322   :  { %2933 = vtanh.f32 %v1408_v21  ;;  %v1314_v57 = vmul.f32 %v1282_v1, %v3819_v4  ;;  %v1283_v25 = vmul.f32 0.044715, %v3829_v29  ;;  %v1409_v6 = vmul.f32 0.7978846, %v1377_v33 }
 0x323   :  { %v3840_v38 = vadd.f32 %v1501_v36, %v1156_v46  ;;  %v1248_v33 = vmul.f32 0.5, %v3787_v28 }
 0x324   :  { %v2930_v26 = vpop.eup %2929  ;;  %v1346_v48 = vmul.f32 %v1314_v57, %v3819_v4  ;;  %v1315_v39 = vmul.f32 %v1283_v25, %v3829_v29  ;;  %2935 = vtanh.f32 %v1409_v6 }
 0x325   :  { %v1470_v47 = vadd.f32 1.0, %v2930_v26  ;;  %v1189_v60 = vpop.f32.mrb[80].mxu0  ;;  %v1556_v52 = vpack.c.bf16 %v3840_v38, %v3833_v54 }
 0x326   :  { %v1378_v15 = vadd.f32 %v1346_v48, %v3819_v4  ;;  %v1347_v44 = vmul.f32 %v1315_v39, %v3829_v29  ;;  %v3850_v35 = vadd.f32 %v1189_v60, %v3541_v42  ;;  %v3852_v62 = vpop.f32.mrb[81].mxu0  ;;  %v2932_v51 = vpop.eup %2931 }
 0x327   :  { %v1502_v19 = vmul.f32 %v1470_v47, %v1246_v31  ;;  %v1193_v8 = vpop.f32.mrb[82].mxu0  ;;  %2692 = vmatprep.mubr.bf16.mxu1 %v1556_v52  ;;  %v1471_v58 = vadd.f32 1.0, %v2932_v51  ;;  %v1172_v47 = vadd.f32 %v3789_v0, %v3576_v14  ;;  %v1176_v0 = vadd.f32 %v3804_v20, %v3576_v14 }
 0x328   :  { %v1410_v43 = vmul.f32 0.7978846, %v1378_v15  ;;  %v1379_v13 = vadd.f32 %v1347_v44, %v3829_v29  ;;  %v1284_v50 = vmul.f32 0.044715, %v3850_v35  ;;  %v3859_v59 = vpop.f32.mrb[83].mxu0  ;;  %v3866_v27 = vadd.f32 %v1193_v8, %v3541_v42 }
 0x329   :  { %v3861_v61 = vadd.f32 %v1502_v19, %v1162_v3  ;;  %v1503_v2 = vmul.f32 %v1471_v58, %v1247_v16  ;;  %v1249_v15 = vmul.f32 0.5, %v3802_v55 }
 0x32a   :  { %2937 = vtanh.f32 %v1410_v43  ;;  %v1411_v49 = vmul.f32 0.7978846, %v1379_v13  ;;  %v1316_v11 = vmul.f32 %v1284_v50, %v3850_v35  ;;  %v1285_v21 = vmul.f32 0.044715, %v3866_v27 }
 0x32b   :  { %v3870_v46 = vadd.f32 %v1503_v2, %v1166_v9 }
 0x32c   :  { %v2934_v1 = vpop.eup %2933  ;;  %2939 = vtanh.f32 %v1411_v49  ;;  %v1348_v36 = vmul.f32 %v1316_v11, %v3850_v35  ;;  %v1317_v45 = vmul.f32 %v1285_v21, %v3866_v27  ;;  %v1250_v11 = vmul.f32 0.5, %v3819_v4 }
 0x32d   :  { %v1472_v57 = vadd.f32 1.0, %v2934_v1  ;;  %v1199_v25 = vpop.f32.mrb[84].mxu0  ;;  %v1557_v39 = vpack.c.bf16 %v3870_v46, %v3861_v61 }
 0x32e   :  { %v1380_v6 = vadd.f32 %v1348_v36, %v3850_v35  ;;  %v3877_v26 = vadd.f32 %v1199_v25, %v3541_v42  ;;  %v3879_v48 = vpop.f32.mrb[85].mxu0  ;;  %v2936_v31 = vpop.eup %2935  ;;  %v1349_v28 = vmul.f32 %v1317_v45, %v3866_v27 }
 0x32f   :  { %v1504_v60 = vmul.f32 %v1472_v57, %v1248_v33  ;;  %v1203_v52 = vpop.f32.mrb[86].mxu0  ;;  %v1473_v44 = vadd.f32 1.0, %v2936_v31  ;;  %2693 = vmatmul.mubr.bf16.gmra.mrb[48].mxu1 %v1557_v39  ;;  %v1182_v33 = vadd.f32 %v3821_v22, %v3576_v14  ;;  %v1251_v39 = vmul.f32 0.5, %v3829_v29 }
 0x330   :  { %v1412_v51 = vmul.f32 0.7978846, %v1380_v6  ;;  %v1286_v3 = vmul.f32 0.044715, %v3877_v26  ;;  %v1381_v16 = vadd.f32 %v1349_v28, %v3866_v27  ;;  %v3892_v8 = vadd.f32 %v1203_v52, %v3541_v42  ;;  %v3894_v58 = vpop.f32.mrb[87].mxu0 }
 0x331   :  { %v3888_v19 = vadd.f32 %v1504_v60, %v1172_v47  ;;  %v1505_v43 = vmul.f32 %v1473_v44, %v1249_v15 }
 0x332   :  { %2941 = vtanh.f32 %v1412_v51  ;;  %v1318_v55 = vmul.f32 %v1286_v3, %v3877_v26  ;;  %v1413_v13 = vmul.f32 0.7978846, %v1381_v16  ;;  %v1287_v50 = vmul.f32 0.044715, %v3892_v8 }
 0x333   :  { %v3900_v2 = vadd.f32 %v1505_v43, %v1176_v0  ;;  %v1186_v51 = vadd.f32 %v3831_v32, %v3576_v14 }
 0x334   :  { %v2938_v9 = vpop.eup %2937  ;;  %v1350_v49 = vmul.f32 %v1318_v55, %v3877_v26  ;;  %2943 = vtanh.f32 %v1413_v13  ;;  %v1319_v1 = vmul.f32 %v1287_v50, %v3892_v8 }
 0x335   :  { %v1474_v21 = vadd.f32 1.0, %v2938_v9  ;;  %v1209_v36 = vpop.f32.mrb[88].mxu0  ;;  %v1558_v6 = vpack.c.bf16 %v3900_v2, %v3888_v19 }
 0x336   :  { %v2940_v20 = vpop.eup %2939  ;;  %v1382_v57 = vadd.f32 %v1350_v49, %v3877_v26  ;;  %v3909_v45 = vadd.f32 %v1209_v36, %v3541_v42  ;;  %v3911_v25 = vpop.f32.mrb[89].mxu0  ;;  %v1351_v47 = vmul.f32 %v1319_v1, %v3892_v8  ;;  %v1252_v49 = vmul.f32 0.5, %v3850_v35 }
 0x337   :  { %v1506_v4 = vmul.f32 %v1474_v21, %v1250_v11  ;;  %v1475_v31 = vadd.f32 1.0, %v2940_v20  ;;  %v1213_v60 = vpop.f32.mrb[90].mxu0  ;;  %2696 = vmatprep.mubr.bf16.mxu1 %v1558_v6  ;;  %v1192_v6 = vadd.f32 %v3852_v62, %v3576_v14  ;;  %v1253_v35 = vmul.f32 0.5, %v3866_v27 }
 0x338   :  { %v1414_v28 = vmul.f32 0.7978846, %v1382_v57  ;;  %v1288_v22 = vmul.f32 0.044715, %v3909_v45  ;;  %v3919_v52 = vadd.f32 %v1213_v60, %v3541_v42  ;;  %v3921_v15 = vpop.f32.mrb[91].mxu0  ;;  %v1383_v29 = vadd.f32 %v1351_v47, %v3892_v8 }
 0x339   :  { %v3923_v44 = vadd.f32 %v1506_v4, %v1182_v33  ;;  %v1507_v3 = vmul.f32 %v1475_v31, %v1251_v39 }
 0x33a   :  { %2945 = vtanh.f32 %v1414_v28  ;;  %v1320_v16 = vmul.f32 %v1288_v22, %v3909_v45  ;;  %v1289_v0 = vmul.f32 0.044715, %v3919_v52  ;;  %v1415_v55 = vmul.f32 0.7978846, %v1383_v29 }
 0x33b   :  { %v3930_v43 = vadd.f32 %v1507_v3, %v1186_v51  ;;  %v1196_v3 = vadd.f32 %v3859_v59, %v3576_v14 }
 0x33c   :  { %v2942_v13 = vpop.eup %2941  ;;  %v1352_v50 = vmul.f32 %v1320_v16, %v3909_v45  ;;  %v1321_v9 = vmul.f32 %v1289_v0, %v3919_v52  ;;  %2947 = vtanh.f32 %v1415_v55 }
 0x33d   :  { %v1476_v11 = vadd.f32 1.0, %v2942_v13  ;;  %v1219_v32 = vpop.f32.mrb[92].mxu0  ;;  %v1559_v21 = vpack.c.bf16 %v3930_v43, %v3923_v44 }
 0x33e   :  { %v1384_v1 = vadd.f32 %v1352_v50, %v3909_v45  ;;  %v1353_v36 = vmul.f32 %v1321_v9, %v3919_v52  ;;  %v1220_v20 = vadd.f32 %v1219_v32, %v3541_v42  ;;  %v3940_v33 = vpop.f32.mrb[93].mxu0  ;;  %v2944_v57 = vpop.eup %2943  ;;  %v1254_v9 = vmul.f32 0.5, %v3877_v26 }
 0x33f   :  { %v1508_v4 = vmul.f32 %v1476_v11, %v1252_v49  ;;  %v1223_v39 = vpop.f32.mrb[94].mxu0  ;;  %2697 = vmatmul.mubr.bf16.gmra.mrb[52].mxu1 %v1559_v21  ;;  %v1477_v31 = vadd.f32 1.0, %v2944_v57  ;;  %v1255_v57 = vmul.f32 0.5, %v3892_v8 }
 0x340   :  { %v1416_v47 = vmul.f32 0.7978846, %v1384_v1  ;;  %v1385_v60 = vadd.f32 %v1353_v36, %v3919_v52  ;;  %v1290_v28 = vmul.f32 0.044715, %v1220_v20  ;;  %v3946_v22 = vpop.f32.mrb[95].mxu0  ;;  %v1224_v29 = vadd.f32 %v1223_v39, %v3541_v42 }
 0x341   :  { %v3948_v51 = vadd.f32 %v1508_v4, %v1192_v6  ;;  %v1509_v62 = vmul.f32 %v1477_v31, %v1253_v35  ;;  %v1202_v42 = vadd.f32 %v3879_v48, %v3576_v14  ;;  %v1206_v39 = vadd.f32 %v3894_v58, %v3576_v14 }
 0x342   :  { %2949 = vtanh.f32 %v1416_v47  ;;  %v1417_v16 = vmul.f32 0.7978846, %v1385_v60  ;;  %v1322_v27 = vmul.f32 %v1290_v28, %v1220_v20  ;;  %v1291_v0 = vmul.f32 0.044715, %v1224_v29 }
 0x343   :  { %v3953_v13 = vadd.f32 %v1509_v62, %v1196_v3  ;;  %v1256_v48 = vmul.f32 0.5, %v3909_v45  ;;  %v1257_v58 = vmul.f32 0.5, %v3919_v52 }
 0x344   :  { %v2946_v55 = vpop.eup %2945  ;;  %2951 = vtanh.f32 %v1417_v16  ;;  %v1354_v50 = vmul.f32 %v1322_v27, %v1220_v20  ;;  %v1323_v11 = vmul.f32 %v1291_v0, %v1224_v29  ;;  %v1212_v16 = vadd.f32 %v3911_v25, %v3576_v14 }
 0x345   :  { %v1478_v49 = vadd.f32 1.0, %v2946_v55  ;;  %v1560_v59 = vpack.c.bf16 %v3953_v13, %v3948_v51  ;;  %v1258_v25 = vmul.f32 0.5, %v1220_v20 }
 0x346   :  { %v1386_v32 = vadd.f32 %v1354_v50, %v1220_v20  ;;  %v2948_v21 = vpop.eup %2947  ;;  %v1355_v36 = vmul.f32 %v1323_v11, %v1224_v29  ;;  %v1216_v50 = vadd.f32 %v3921_v15, %v3576_v14  ;;  %v1226_v20 = vadd.f32 %v3946_v22, %v3576_v14  ;;  %v2826_v22 = vld [vmem:[%s4385_s1 + $0x104] ss:$24 sps:$4 sm:$0xff]  }
 0x347   :  { %v1510_v1 = vmul.f32 %v1478_v49, %v1254_v9  ;;  %v1479_v6 = vadd.f32 1.0, %v2948_v21  ;;  %2700 = vmatprep.mubr.bf16.mxu1 %v1560_v59  ;;  %v2821_v9 = vld [vmem:[%s4385_s1 + $0x14] ss:$24 sps:$4 sm:$0xff]   ;;  %v2822_v59 = vld [vmem:[%s4385_s1 + $0x44] ss:$24 sps:$4 sm:$0xff]   ;;  %v1222_v21 = vadd.f32 %v3940_v33, %v3576_v14 }
 0x348   :  { %v1418_v4 = vmul.f32 0.7978846, %v1386_v32  ;;  %v1387_v26 = vadd.f32 %v1355_v36, %v1224_v29  ;;  %2708 = vmatprep.subr.bf16.mxu1 %v2821_v9  ;;  %v2825_v14 = vld [vmem:[%s4385_s1 + $0xd4] ss:$24 sps:$4 sm:$0xff]  }
 0x349   :  { %v3961_v35 = vadd.f32 %v1510_v1, %v1202_v42  ;;  %v1511_v31 = vmul.f32 %v1479_v6, %v1255_v57  ;;  %2709 = vmatpush3.bf16.msra.mxu1 %v2821_v9  ;;  %v1259_v1 = vmul.f32 0.5, %v1224_v29  ;;  %v2824_v29 = vld [vmem:[%s4385_s1 + $0xa4] ss:$24 sps:$4 sm:$0xff]  }
 0x34a   :  { %2953 = vtanh.f32 %v1418_v4  ;;  %v1419_v47 = vmul.f32 0.7978846, %v1387_v26  ;;  %2710 = vmatprep.subr.bf16.mxu1 %v2822_v59  ;;  %v2823_v4 = vld [vmem:[%s4385_s1 + $0x74] ss:$24 sps:$4 sm:$0xff]  }
 0x34b   :  { %v3965_v28 = vadd.f32 %v1511_v31, %v1206_v39  ;;  %v2827_v39 = vld [vmem:[%s4385_s1 + $0x134] ss:$24 sps:$4 sm:$0xff]   ;;  %v2828_v31 = vld [vmem:[%s4385_s1 + $0x164] ss:$24 sps:$4 sm:$0xff]  }
 0x34c   :  { %v2950_v60 = vpop.eup %2949  ;;  %2955 = vtanh.f32 %v1419_v47  ;;  %v4018_v47 = vld [vmem:[%s4387_s2 + $0x4] ss:$0 sm:$0xff] }
 0x34d   :  { %v1480_v3 = vadd.f32 1.0, %v2950_v60  ;;  %v1561_v62 = vpack.c.bf16 %v3965_v28, %v3961_v35  ;;  %2711 = vmatpush3.bf16.msra.mxu1 %v2822_v59 }
 0x34e   :  { %v2952_v8 = vpop.eup %2951  ;;  %2712 = vmatprep.subr.bf16.mxu1 %v2823_v4 }
 0x34f   :  { %v1512_v27 = vmul.f32 %v1480_v3, %v1256_v48  ;;  %v1481_v0 = vadd.f32 1.0, %v2952_v8  ;;  %2701 = vmatmul.mubr.bf16.gmra.mrb[56].mxu1 %v1561_v62 }
 0x351   :  { %v3973_v55 = vadd.f32 %v1512_v27, %v1212_v16  ;;  %v1513_v45 = vmul.f32 %v1481_v0, %v1257_v58  ;;  %2713 = vmatpush3.bf16.msra.mxu1 %v2823_v4 }
 0x352   :  { %2714 = vmatprep.subr.bf16.mxu1 %v2824_v29 }
 0x353   :  { %v3980_v49 = vadd.f32 %v1513_v45, %v1216_v50 }
 0x354   :  { %v2954_v11 = vpop.eup %2953 }
 0x355   :  { %v1482_v32 = vadd.f32 1.0, %v2954_v11  ;;  %v1562_v52 = vpack.c.bf16 %v3980_v49, %v3973_v55  ;;  %2715 = vmatpush3.bf16.msra.mxu1 %v2824_v29 }
 0x356   :  { %v2956_v15 = vpop.eup %2955  ;;  %2716 = vmatprep.subr.bf16.mxu1 %v2825_v14 }
 0x357   :  { %v1514_v42 = vmul.f32 %v1482_v32, %v1258_v25  ;;  %2704 = vmatprep.mubr.bf16.mxu1 %v1562_v52  ;;  %v1483_v36 = vadd.f32 1.0, %v2956_v15 }
 0x359   :  { %v3989_v57 = vadd.f32 %v1514_v42, %v1222_v21  ;;  %v1515_v6 = vmul.f32 %v1483_v36, %v1259_v1  ;;  %2717 = vmatpush3.bf16.msra.mxu1 %v2825_v14 }
 0x35a   :  { %2718 = vmatprep.subr.bf16.mxu1 %v2826_v22 }
 0x35b   :  { %v3996_v26 = vadd.f32 %v1515_v6, %v1226_v20 }
 0x35d   :  { %v1563_v33 = vpack.c.bf16 %v3996_v26, %v3989_v57  ;;  %2719 = vmatpush3.bf16.msra.mxu1 %v2826_v22 }
 0x35e   :  { %2720 = vmatprep.subr.bf16.mxu1 %v2827_v39 }
 0x35f   :  { %2705 = vmatmul.mubr.bf16.gmra.mrb[60].mxu1 %v1563_v33 }
 0x361   :  { %2721 = vmatpush3.bf16.msra.mxu1 %v2827_v39 }
 0x362   :  { %2722 = vmatprep.subr.bf16.mxu1 %v2828_v31 }
 0x365   :  { %2723 = vmatpush3.bf16.msra.mxu1 %v2828_v31 }
 0x3c2   :  { %v2678_v60 = vpop.f32.mrb[32].mxu1 }
 0x3c3   :  { %v1678_v48 = vadd.f32 %v2678_v60, %v4018_v47  ;;  %v1669_v3 = vpop.f32.mrb[33].mxu1 }
 0x3c4   :  { %v1670_v8 = vadd.f32 %v4018_v47, %v1669_v3  ;;  %v2679_v62 = vpop.f32.mrb[34].mxu1 }
 0x3c5   :  { %v1830_v16 = vmul.f32 0.044715, %v1678_v48  ;;  %v1681_v27 = vadd.f32 %v2679_v62, %v4018_v47  ;;  %v1672_v58 = vpop.f32.mrb[35].mxu1 }
 0x3c6   :  { %v1828_v0 = vmul.f32 0.044715, %v1670_v8  ;;  %v1673_v50 = vadd.f32 %v4018_v47, %v1672_v58 }
 0x3c7   :  { %v1862_v45 = vmul.f32 %v1830_v16, %v1678_v48  ;;  %v1831_v9 = vmul.f32 0.044715, %v1681_v27 }
 0x3c8   :  { %v1860_v11 = vmul.f32 %v1828_v0, %v1670_v8  ;;  %v1829_v25 = vmul.f32 0.044715, %v1673_v50 }
 0x3c9   :  { %v1894_v32 = vmul.f32 %v1862_v45, %v1678_v48  ;;  %v1863_v52 = vmul.f32 %v1831_v9, %v1681_v27 }
 0x3ca   :  { %v1892_v59 = vmul.f32 %v1860_v11, %v1670_v8  ;;  %v1861_v15 = vmul.f32 %v1829_v25, %v1673_v50 }
 0x3cb   :  { %v1926_v21 = vadd.f32 %v1894_v32, %v1678_v48  ;;  %v1895_v42 = vmul.f32 %v1863_v52, %v1681_v27 }
 0x3cc   :  { %v1924_v1 = vadd.f32 %v1892_v59, %v1670_v8  ;;  %v1893_v36 = vmul.f32 %v1861_v15, %v1673_v50  ;;  %v1798_v59 = vmul.f32 0.5, %v1678_v48 }
 0x3cd   :  { %v1958_v20 = vmul.f32 0.7978846, %v1926_v21  ;;  %v1927_v6 = vadd.f32 %v1895_v42, %v1681_v27  ;;  %v1796_v42 = vmul.f32 0.5, %v1670_v8 }
 0x3ce   :  { %v1925_v4 = vadd.f32 %v1893_v36, %v1673_v50  ;;  %v1956_v33 = vmul.f32 0.7978846, %v1924_v1 }
 0x3cf   :  { %2957 = vtanh.f32 %v1958_v20  ;;  %v1959_v29 = vmul.f32 0.7978846, %v1927_v6  ;;  %v1799_v20 = vmul.f32 0.5, %v1681_v27 }
 0x3d0   :  { %v1957_v14 = vmul.f32 0.7978846, %v1925_v4  ;;  %2959 = vtanh.f32 %v1956_v33 }
 0x3d1   :  { %2961 = vtanh.f32 %v1959_v29 }
 0x3d2   :  { %v2682_v22 = vpop.f32.mrb[36].mxu1  ;;  %2963 = vtanh.f32 %v1957_v14 }
 0x3d3   :  { %v4025_v39 = vadd.f32 %v2682_v22, %v4018_v47  ;;  %v1685_v31 = vpop.f32.mrb[37].mxu1  ;;  %v1797_v22 = vmul.f32 0.5, %v1673_v50 }
 0x3d4   :  { %v4028_v60 = vadd.f32 %v4018_v47, %v1685_v31  ;;  %v2683_v3 = vpop.f32.mrb[38].mxu1 }
 0x3d5   :  { %v1834_v62 = vmul.f32 0.044715, %v4025_v39  ;;  %v4032_v16 = vadd.f32 %v2683_v3, %v4018_v47  ;;  %v1688_v58 = vpop.f32.mrb[39].mxu1 }
 0x3d6   :  { %v1832_v0 = vmul.f32 0.044715, %v4028_v60  ;;  %v4036_v45 = vadd.f32 %v4018_v47, %v1688_v58 }
 0x3d7   :  { %v1866_v9 = vmul.f32 %v1834_v62, %v4025_v39  ;;  %v1835_v11 = vmul.f32 0.044715, %v4032_v16 }
 0x3d8   :  { %v1864_v25 = vmul.f32 %v1832_v0, %v4028_v60  ;;  %v1833_v32 = vmul.f32 0.044715, %v4036_v45 }
 0x3d9   :  { %v2958_v52 = vpop.eup %2957  ;;  %v1898_v15 = vmul.f32 %v1866_v9, %v4025_v39  ;;  %v1867_v21 = vmul.f32 %v1835_v11, %v4032_v16 }
 0x3da   :  { %v2960_v1 = vpop.eup %2959  ;;  %v2022_v36 = vadd.f32 1.0, %v2958_v52  ;;  %v1896_v6 = vmul.f32 %v1864_v25, %v4028_v60  ;;  %v1865_v4 = vmul.f32 %v1833_v32, %v4036_v45 }
 0x3db   :  { %v2962_v33 = vpop.eup %2961  ;;  %v1930_v29 = vadd.f32 %v1898_v15, %v4025_v39  ;;  %v1899_v14 = vmul.f32 %v1867_v21, %v4032_v16  ;;  %v2020_v31 = vadd.f32 1.0, %v2960_v1 }
 0x3dc   :  { %v2964_v48 = vpop.eup %2963  ;;  %v2054_v3 = vmul.f32 %v2022_v36, %v1798_v59  ;;  %v2023_v62 = vadd.f32 1.0, %v2962_v33  ;;  %v1928_v58 = vadd.f32 %v1896_v6, %v4028_v60  ;;  %v1897_v8 = vmul.f32 %v1865_v4, %v4036_v45 }
 0x3dd   :  { %v1931_v27 = vadd.f32 %v1899_v14, %v4032_v16  ;;  %v2021_v0 = vadd.f32 1.0, %v2964_v48  ;;  %v2052_v9 = vmul.f32 %v2020_v31, %v1796_v42  ;;  %v1962_v11 = vmul.f32 0.7978846, %v1930_v29 }
 0x3de   :  { %v2055_v25 = vmul.f32 %v2023_v62, %v1799_v20  ;;  %v1929_v32 = vadd.f32 %v1897_v8, %v4036_v45  ;;  %v1960_v52 = vmul.f32 0.7978846, %v1928_v58  ;;  %v2086_v50 = vadd.f32 %v2054_v3, %v3618_v7 }
 0x3df   :  { %v2053_v15 = vmul.f32 %v2021_v0, %v1797_v22  ;;  %v1963_v21 = vmul.f32 0.7978846, %v1931_v27  ;;  %2965 = vtanh.f32 %v1962_v11  ;;  %v2084_v6 = vadd.f32 %v2052_v9, %v3592_v30 }
 0x3e0   :  { %v2087_v59 = vadd.f32 %v2055_v25, %v3630_v18  ;;  %v1961_v1 = vmul.f32 0.7978846, %v1929_v32  ;;  %2967 = vtanh.f32 %v1960_v52  ;;  %v1800_v25 = vmul.f32 0.5, %v4028_v60 }
 0x3e1   :  { %v2085_v4 = vadd.f32 %v2053_v15, %v3599_v37  ;;  %2969 = vtanh.f32 %v1963_v21  ;;  %v1802_v32 = vmul.f32 0.5, %v4025_v39 }
 0x3e2   :  { %v2686_v36 = vpop.f32.mrb[40].mxu1  ;;  %v2117_v33 = vpack.c.bf16 %v2087_v59, %v2086_v50  ;;  %2971 = vtanh.f32 %v1961_v1  ;;  %v1803_v50 = vmul.f32 0.5, %v4032_v16 }
 0x3e3   :  { %v4057_v42 = vadd.f32 %v2686_v36, %v4018_v47  ;;  %v1701_v20 = vpop.f32.mrb[41].mxu1  ;;  %v2116_v14 = vpack.c.bf16 %v2085_v4, %v2084_v6  ;;  %v1801_v4 = vmul.f32 0.5, %v4036_v45 }
 0x3e4   :  { %v4060_v29 = vadd.f32 %v4018_v47, %v1701_v20  ;;  %v2687_v7 = vpop.f32.mrb[42].mxu1 }
 0x3e5   :  { %v1838_v18 = vmul.f32 0.044715, %v4057_v42  ;;  %v4064_v22 = vadd.f32 %v2687_v7, %v4018_v47  ;;  %v1704_v30 = vpop.f32.mrb[43].mxu1  ;;  %2724 = vmatprep.mubr.bf16.mxu1 %v2116_v14 }
 0x3e6   :  { %v1836_v37 = vmul.f32 0.044715, %v4060_v29  ;;  %v4068_v31 = vadd.f32 %v4018_v47, %v1704_v30  ;;  %2725 = vmatmul.mubr.bf16.vlgmr.msra.gmra.mrb[64].mxu1 %v2117_v33 }
 0x3e7   :  { %v1870_v48 = vmul.f32 %v1838_v18, %v4057_v42  ;;  %v1839_v3 = vmul.f32 0.044715, %v4064_v22 }
 0x3e8   :  { %v1868_v62 = vmul.f32 %v1836_v37, %v4060_v29  ;;  %v1837_v58 = vmul.f32 0.044715, %v4068_v31 }
 0x3e9   :  { %v1902_v8 = vmul.f32 %v1870_v48, %v4057_v42  ;;  %v1871_v27 = vmul.f32 %v1839_v3, %v4064_v22  ;;  %v2966_v0 = vpop.eup %2965 }
 0x3ea   :  { %v1900_v9 = vmul.f32 %v1868_v62, %v4060_v29  ;;  %v1869_v11 = vmul.f32 %v1837_v58, %v4068_v31  ;;  %v2968_v52 = vpop.eup %2967  ;;  %v2026_v59 = vadd.f32 1.0, %v2966_v0 }
 0x3eb   :  { %v1934_v15 = vadd.f32 %v1902_v8, %v4057_v42  ;;  %v1903_v21 = vmul.f32 %v1871_v27, %v4064_v22  ;;  %v2970_v1 = vpop.eup %2969  ;;  %v2024_v20 = vadd.f32 1.0, %v2968_v52 }
 0x3ec   :  { %v1932_v36 = vadd.f32 %v1900_v9, %v4060_v29  ;;  %v1901_v6 = vmul.f32 %v1869_v11, %v4068_v31  ;;  %v2972_v33 = vpop.eup %2971  ;;  %v2027_v39 = vadd.f32 1.0, %v2970_v1  ;;  %v2058_v7 = vmul.f32 %v2026_v59, %v1802_v32 }
 0x3ed   :  { %v1935_v60 = vadd.f32 %v1903_v21, %v4064_v22  ;;  %v1966_v14 = vmul.f32 0.7978846, %v1934_v15  ;;  %v2025_v30 = vadd.f32 1.0, %v2972_v33  ;;  %v2056_v37 = vmul.f32 %v2024_v20, %v1800_v25 }
 0x3ee   :  { %v1933_v18 = vadd.f32 %v1901_v6, %v4068_v31  ;;  %v1964_v16 = vmul.f32 0.7978846, %v1932_v36  ;;  %v2059_v48 = vmul.f32 %v2027_v39, %v1803_v50  ;;  %v2090_v45 = vadd.f32 %v2058_v7, %v3681_v12 }
 0x3ef   :  { %v1967_v3 = vmul.f32 0.7978846, %v1935_v60  ;;  %2973 = vtanh.f32 %v1966_v14  ;;  %v2057_v62 = vmul.f32 %v2025_v30, %v1801_v4  ;;  %v2088_v27 = vadd.f32 %v2056_v37, %v3653_v5 }
 0x3f0   :  { %v1965_v58 = vmul.f32 0.7978846, %v1933_v18  ;;  %2975 = vtanh.f32 %v1964_v16  ;;  %v2091_v8 = vadd.f32 %v2059_v48, %v3690_v23  ;;  %v1804_v20 = vmul.f32 0.5, %v4060_v29 }
 0x3f1   :  { %2977 = vtanh.f32 %v1967_v3  ;;  %v2089_v0 = vadd.f32 %v2057_v62, %v3660_v41  ;;  %v1806_v33 = vmul.f32 0.5, %v4057_v42  ;;  %v1807_v14 = vmul.f32 0.5, %v4064_v22 }
 0x3f2   :  { %2979 = vtanh.f32 %v1965_v58  ;;  %v2690_v9 = vpop.f32.mrb[44].mxu1  ;;  %v2119_v11 = vpack.c.bf16 %v2091_v8, %v2090_v45  ;;  %v1805_v48 = vmul.f32 0.5, %v4068_v31 }
 0x3f3   :  { %v4093_v25 = vadd.f32 %v2690_v9, %v4018_v47  ;;  %v1717_v32 = vpop.f32.mrb[45].mxu1  ;;  %v2118_v52 = vpack.c.bf16 %v2089_v0, %v2088_v27 }
 0x3f4   :  { %v4096_v15 = vadd.f32 %v4018_v47, %v1717_v32  ;;  %v2691_v21 = vpop.f32.mrb[46].mxu1 }
 0x3f5   :  { %v1842_v12 = vmul.f32 0.044715, %v4093_v25  ;;  %v4100_v23 = vadd.f32 %v2691_v21, %v4018_v47  ;;  %v1720_v5 = vpop.f32.mrb[47].mxu1  ;;  %2728 = vmatprep.mubr.bf16.mxu1 %v2118_v52 }
 0x3f6   :  { %v1840_v41 = vmul.f32 0.044715, %v4096_v15  ;;  %v4104_v50 = vadd.f32 %v4018_v47, %v1720_v5  ;;  %2729 = vmatmul.mubr.bf16.gmra.mrb[68].mxu1 %v2119_v11 }
 0x3f7   :  { %v1874_v59 = vmul.f32 %v1842_v12, %v4093_v25  ;;  %v1843_v1 = vmul.f32 0.044715, %v4100_v23 }
 0x3f8   :  { %v1872_v6 = vmul.f32 %v1840_v41, %v4096_v15  ;;  %v1841_v4 = vmul.f32 0.044715, %v4104_v50 }
 0x3f9   :  { %v2974_v36 = vpop.eup %2973  ;;  %v1906_v39 = vmul.f32 %v1874_v59, %v4093_v25  ;;  %v1875_v7 = vmul.f32 %v1843_v1, %v4100_v23 }
 0x3fa   :  { %v2976_v60 = vpop.eup %2975  ;;  %v2030_v18 = vadd.f32 1.0, %v2974_v36  ;;  %v1904_v37 = vmul.f32 %v1872_v6, %v4096_v15  ;;  %v1873_v16 = vmul.f32 %v1841_v4, %v4104_v50 }
 0x3fb   :  { %v2978_v30 = vpop.eup %2977  ;;  %v2028_v3 = vadd.f32 1.0, %v2976_v60  ;;  %v1938_v29 = vadd.f32 %v1906_v39, %v4093_v25  ;;  %v1907_v42 = vmul.f32 %v1875_v7, %v4100_v23 }
 0x3fc   :  { %v2980_v62 = vpop.eup %2979  ;;  %v2031_v58 = vadd.f32 1.0, %v2978_v30  ;;  %v2062_v45 = vmul.f32 %v2030_v18, %v1806_v33  ;;  %v1936_v8 = vadd.f32 %v1904_v37, %v4096_v15  ;;  %v1905_v22 = vmul.f32 %v1873_v16, %v4104_v50 }
 0x3fd   :  { %v2029_v27 = vadd.f32 1.0, %v2980_v62  ;;  %v2060_v0 = vmul.f32 %v2028_v3, %v1804_v20  ;;  %v1939_v9 = vadd.f32 %v1907_v42, %v4100_v23  ;;  %v1970_v32 = vmul.f32 0.7978846, %v1938_v29 }
 0x3fe   :  { %v2063_v11 = vmul.f32 %v2031_v58, %v1807_v14  ;;  %v1937_v31 = vadd.f32 %v1905_v22, %v4104_v50  ;;  %v1968_v21 = vmul.f32 0.7978846, %v1936_v8  ;;  %v2094_v12 = vadd.f32 %v2062_v45, %v3743_v24 }
 0x3ff   :  { %v2061_v52 = vmul.f32 %v2029_v27, %v1805_v48  ;;  %v1971_v41 = vmul.f32 0.7978846, %v1939_v9  ;;  %2981 = vtanh.f32 %v1970_v32  ;;  %v2092_v59 = vadd.f32 %v2060_v0, %v3708_v56 }
 0x400   :  { %v2095_v5 = vadd.f32 %v2063_v11, %v3750_v34  ;;  %v1969_v36 = vmul.f32 0.7978846, %v1937_v31  ;;  %2983 = vtanh.f32 %v1968_v21  ;;  %v1808_v29 = vmul.f32 0.5, %v4096_v15 }
 0x401   :  { %v2093_v1 = vadd.f32 %v2061_v52, %v3720_v40  ;;  %2985 = vtanh.f32 %v1971_v41  ;;  %v1810_v42 = vmul.f32 0.5, %v4093_v25  ;;  %v1811_v22 = vmul.f32 0.5, %v4100_v23 }
 0x402   :  { %v2121_v6 = vpack.c.bf16 %v2095_v5, %v2094_v12  ;;  %v2694_v4 = vpop.f32.mrb[48].mxu1  ;;  %2987 = vtanh.f32 %v1969_v36  ;;  %v1809_v32 = vmul.f32 0.5, %v4104_v50 }
 0x403   :  { %v2120_v20 = vpack.c.bf16 %v2093_v1, %v2092_v59  ;;  %v4129_v33 = vadd.f32 %v2694_v4, %v4018_v47  ;;  %v1733_v60 = vpop.f32.mrb[49].mxu1 }
 0x404   :  { %v4132_v24 = vadd.f32 %v4018_v47, %v1733_v60  ;;  %v2695_v34 = vpop.f32.mrb[50].mxu1 }
 0x405   :  { %2732 = vmatprep.mubr.bf16.mxu1 %v2120_v20  ;;  %v1846_v56 = vmul.f32 0.044715, %v4129_v33  ;;  %v4136_v40 = vadd.f32 %v2695_v34, %v4018_v47  ;;  %v1736_v39 = vpop.f32.mrb[51].mxu1 }
 0x406   :  { %2733 = vmatmul.mubr.bf16.gmra.mrb[72].mxu1 %v2121_v6  ;;  %v1844_v7 = vmul.f32 0.044715, %v4132_v24  ;;  %v4140_v14 = vadd.f32 %v4018_v47, %v1736_v39 }
 0x407   :  { %v1878_v18 = vmul.f32 %v1846_v56, %v4129_v33  ;;  %v1847_v30 = vmul.f32 0.044715, %v4136_v40 }
 0x408   :  { %v1876_v37 = vmul.f32 %v1844_v7, %v4132_v24  ;;  %v1845_v16 = vmul.f32 0.044715, %v4140_v14 }
 0x409   :  { %v2982_v48 = vpop.eup %2981  ;;  %v1910_v3 = vmul.f32 %v1878_v18, %v4129_v33  ;;  %v1879_v62 = vmul.f32 %v1847_v30, %v4136_v40 }
 0x40a   :  { %v2984_v58 = vpop.eup %2983  ;;  %v1908_v45 = vmul.f32 %v1876_v37, %v4132_v24  ;;  %v1877_v8 = vmul.f32 %v1845_v16, %v4140_v14  ;;  %v2034_v27 = vadd.f32 1.0, %v2982_v48 }
 0x40b   :  { %v2986_v0 = vpop.eup %2985  ;;  %v1942_v9 = vadd.f32 %v1910_v3, %v4129_v33  ;;  %v1911_v11 = vmul.f32 %v1879_v62, %v4136_v40  ;;  %v2032_v31 = vadd.f32 1.0, %v2984_v58 }
 0x40c   :  { %v2988_v52 = vpop.eup %2987  ;;  %v1940_v15 = vadd.f32 %v1908_v45, %v4132_v24  ;;  %v1909_v25 = vmul.f32 %v1877_v8, %v4140_v14  ;;  %v2035_v21 = vadd.f32 1.0, %v2986_v0  ;;  %v2066_v12 = vmul.f32 %v2034_v27, %v1810_v42 }
 0x40d   :  { %v1943_v5 = vadd.f32 %v1911_v11, %v4136_v40  ;;  %v2033_v41 = vadd.f32 1.0, %v2988_v52  ;;  %v2064_v23 = vmul.f32 %v2032_v31, %v1808_v29  ;;  %v1974_v59 = vmul.f32 0.7978846, %v1942_v9 }
 0x40e   :  { %v1941_v1 = vadd.f32 %v1909_v25, %v4140_v14  ;;  %v2067_v36 = vmul.f32 %v2035_v21, %v1811_v22  ;;  %v1972_v6 = vmul.f32 0.7978846, %v1940_v15  ;;  %v2098_v50 = vadd.f32 %v2066_v12, %v3798_v63 }
 0x40f   :  { %v2065_v4 = vmul.f32 %v2033_v41, %v1809_v32  ;;  %v1975_v20 = vmul.f32 0.7978846, %v1943_v5  ;;  %2989 = vtanh.f32 %v1974_v59  ;;  %v2096_v39 = vadd.f32 %v2064_v23, %v3771_v53 }
 0x410   :  { %v2099_v60 = vadd.f32 %v2067_v36, %v3810_v10  ;;  %v1973_v34 = vmul.f32 0.7978846, %v1941_v1  ;;  %2991 = vtanh.f32 %v1972_v6  ;;  %v1812_v11 = vmul.f32 0.5, %v4132_v24 }
 0x411   :  { %v2097_v7 = vadd.f32 %v2065_v4, %v3780_v17  ;;  %2993 = vtanh.f32 %v1975_v20  ;;  %v1814_v32 = vmul.f32 0.5, %v4129_v33  ;;  %v1815_v25 = vmul.f32 0.5, %v4136_v40 }
 0x412   :  { %v2698_v56 = vpop.f32.mrb[52].mxu1  ;;  %v2123_v37 = vpack.c.bf16 %v2099_v60, %v2098_v50  ;;  %2995 = vtanh.f32 %v1973_v34  ;;  %v1813_v23 = vmul.f32 0.5, %v4140_v14 }
 0x413   :  { %v4165_v18 = vadd.f32 %v2698_v56, %v4018_v47  ;;  %v1749_v30 = vpop.f32.mrb[53].mxu1  ;;  %v2122_v48 = vpack.c.bf16 %v2097_v7, %v2096_v39 }
 0x414   :  { %v4168_v16 = vadd.f32 %v4018_v47, %v1749_v30  ;;  %v2699_v63 = vpop.f32.mrb[54].mxu1 }
 0x415   :  { %v1850_v10 = vmul.f32 0.044715, %v4165_v18  ;;  %v4172_v3 = vadd.f32 %v2699_v63, %v4018_v47  ;;  %v1752_v53 = vpop.f32.mrb[55].mxu1  ;;  %2736 = vmatprep.mubr.bf16.mxu1 %v2122_v48 }
 0x416   :  { %v1848_v17 = vmul.f32 0.044715, %v4168_v16  ;;  %v4176_v62 = vadd.f32 %v4018_v47, %v1752_v53  ;;  %2737 = vmatmul.mubr.bf16.gmra.mrb[76].mxu1 %v2123_v37 }
 0x417   :  { %v1882_v29 = vmul.f32 %v1850_v10, %v4165_v18  ;;  %v1851_v42 = vmul.f32 0.044715, %v4172_v3 }
 0x418   :  { %v1880_v58 = vmul.f32 %v1848_v17, %v4168_v16  ;;  %v1849_v45 = vmul.f32 0.044715, %v4176_v62 }
 0x419   :  { %v1914_v8 = vmul.f32 %v1882_v29, %v4165_v18  ;;  %v1883_v22 = vmul.f32 %v1851_v42, %v4172_v3  ;;  %v2990_v27 = vpop.eup %2989 }
 0x41a   :  { %v1912_v0 = vmul.f32 %v1880_v58, %v4168_v16  ;;  %v1881_v9 = vmul.f32 %v1849_v45, %v4176_v62  ;;  %v2992_v31 = vpop.eup %2991  ;;  %v2038_v21 = vadd.f32 1.0, %v2990_v27 }
 0x41b   :  { %v1946_v52 = vadd.f32 %v1914_v8, %v4165_v18  ;;  %v1915_v15 = vmul.f32 %v1883_v22, %v4172_v3  ;;  %v2994_v12 = vpop.eup %2993  ;;  %v2036_v59 = vadd.f32 1.0, %v2992_v31 }
 0x41c   :  { %v1944_v5 = vadd.f32 %v1912_v0, %v4168_v16  ;;  %v1913_v41 = vmul.f32 %v1881_v9, %v4176_v62  ;;  %v2996_v1 = vpop.eup %2995  ;;  %v2039_v33 = vadd.f32 1.0, %v2994_v12  ;;  %v2070_v36 = vmul.f32 %v2038_v21, %v1814_v32 }
 0x41d   :  { %v1947_v24 = vadd.f32 %v1915_v15, %v4172_v3  ;;  %v1978_v6 = vmul.f32 0.7978846, %v1946_v52  ;;  %v2037_v20 = vadd.f32 1.0, %v2996_v1  ;;  %v2068_v50 = vmul.f32 %v2036_v59, %v1812_v11 }
 0x41e   :  { %v1945_v4 = vadd.f32 %v1913_v41, %v4176_v62  ;;  %v1976_v40 = vmul.f32 0.7978846, %v1944_v5  ;;  %v2071_v60 = vmul.f32 %v2039_v33, %v1815_v25  ;;  %v2102_v14 = vadd.f32 %v2070_v36, %v3861_v61 }
 0x41f   :  { %v1979_v34 = vmul.f32 0.7978846, %v1947_v24  ;;  %2997 = vtanh.f32 %v1978_v6  ;;  %v2069_v56 = vmul.f32 %v2037_v20, %v1813_v23  ;;  %v2100_v30 = vadd.f32 %v2068_v50, %v3833_v54 }
 0x420   :  { %v1977_v39 = vmul.f32 0.7978846, %v1945_v4  ;;  %2999 = vtanh.f32 %v1976_v40  ;;  %v2103_v7 = vadd.f32 %v2071_v60, %v3870_v46  ;;  %v1816_v9 = vmul.f32 0.5, %v4168_v16 }
 0x421   :  { %3001 = vtanh.f32 %v1979_v34  ;;  %v2101_v37 = vadd.f32 %v2069_v56, %v3840_v38  ;;  %v1818_v11 = vmul.f32 0.5, %v4165_v18  ;;  %v1819_v15 = vmul.f32 0.5, %v4172_v3 }
 0x422   :  { %3003 = vtanh.f32 %v1977_v39  ;;  %v2702_v63 = vpop.f32.mrb[56].mxu1  ;;  %v2125_v48 = vpack.c.bf16 %v2103_v7, %v2102_v14  ;;  %v1817_v41 = vmul.f32 0.5, %v4176_v62 }
 0x423   :  { %v4201_v10 = vadd.f32 %v2702_v63, %v4018_v47  ;;  %v1765_v53 = vpop.f32.mrb[57].mxu1  ;;  %v2124_v17 = vpack.c.bf16 %v2101_v37, %v2100_v30 }
 0x424   :  { %v4204_v29 = vadd.f32 %v4018_v47, %v1765_v53  ;;  %v2703_v42 = vpop.f32.mrb[58].mxu1 }
 0x425   :  { %v1854_v61 = vmul.f32 0.044715, %v4201_v10  ;;  %v4208_v46 = vadd.f32 %v2703_v42, %v4018_v47  ;;  %v1768_v54 = vpop.f32.mrb[59].mxu1  ;;  %2740 = vmatprep.mubr.bf16.mxu1 %v2124_v17 }
 0x426   :  { %v1852_v38 = vmul.f32 0.044715, %v4204_v29  ;;  %v4212_v58 = vadd.f32 %v4018_v47, %v1768_v54  ;;  %2741 = vmatmul.mubr.bf16.gmra.mrb[80].mxu1 %v2125_v48 }
 0x427   :  { %v1886_v45 = vmul.f32 %v1854_v61, %v4201_v10  ;;  %v1855_v8 = vmul.f32 0.044715, %v4208_v46 }
 0x428   :  { %v1884_v27 = vmul.f32 %v1852_v38, %v4204_v29  ;;  %v1853_v0 = vmul.f32 0.044715, %v4212_v58 }
 0x429   :  { %v2998_v22 = vpop.eup %2997  ;;  %v1918_v31 = vmul.f32 %v1886_v45, %v4201_v10  ;;  %v1887_v52 = vmul.f32 %v1855_v8, %v4208_v46 }
 0x42a   :  { %v3000_v32 = vpop.eup %2999  ;;  %v2042_v25 = vadd.f32 1.0, %v2998_v22  ;;  %v1916_v12 = vmul.f32 %v1884_v27, %v4204_v29  ;;  %v1885_v5 = vmul.f32 %v1853_v0, %v4212_v58 }
 0x42b   :  { %v3002_v21 = vpop.eup %3001  ;;  %v2040_v23 = vadd.f32 1.0, %v3000_v32  ;;  %v1950_v16 = vadd.f32 %v1918_v31, %v4201_v10  ;;  %v1919_v18 = vmul.f32 %v1887_v52, %v4208_v46  ;;  %v1822_v32 = vmul.f32 0.5, %v4201_v10 }
 0x42c   :  { %v3004_v59 = vpop.eup %3003  ;;  %v2043_v1 = vadd.f32 1.0, %v3002_v21  ;;  %v2074_v24 = vmul.f32 %v2042_v25, %v1818_v11  ;;  %v1948_v33 = vadd.f32 %v1916_v12, %v4204_v29  ;;  %v1917_v3 = vmul.f32 %v1885_v5, %v4212_v58 }
 0x42d   :  { %v2041_v36 = vadd.f32 1.0, %v3004_v59  ;;  %v2072_v6 = vmul.f32 %v2040_v23, %v1816_v9  ;;  %v1951_v4 = vadd.f32 %v1919_v18, %v4208_v46  ;;  %v1982_v50 = vmul.f32 0.7978846, %v1950_v16 }
 0x42e   :  { %v2075_v20 = vmul.f32 %v2043_v1, %v1819_v15  ;;  %v1949_v62 = vadd.f32 %v1917_v3, %v4212_v58  ;;  %v1980_v60 = vmul.f32 0.7978846, %v1948_v33  ;;  %v2106_v34 = vadd.f32 %v2074_v24, %v3923_v44 }
 0x42f   :  { %v2073_v40 = vmul.f32 %v2041_v36, %v1817_v41  ;;  %v1983_v39 = vmul.f32 0.7978846, %v1951_v4  ;;  %3005 = vtanh.f32 %v1982_v50  ;;  %v2104_v14 = vadd.f32 %v2072_v6, %v3888_v19 }
 0x430   :  { %v2107_v56 = vadd.f32 %v2075_v20, %v3930_v43  ;;  %v1981_v30 = vmul.f32 0.7978846, %v1949_v62  ;;  %3007 = vtanh.f32 %v1980_v60  ;;  %v1820_v11 = vmul.f32 0.5, %v4204_v29 }
 0x431   :  { %v2105_v7 = vadd.f32 %v2073_v40, %v3900_v2  ;;  %3009 = vtanh.f32 %v1983_v39  ;;  %v1823_v25 = vmul.f32 0.5, %v4208_v46  ;;  %v1821_v41 = vmul.f32 0.5, %v4212_v58 }
 0x432   :  { %v2127_v37 = vpack.c.bf16 %v2107_v56, %v2106_v34  ;;  %v2706_v63 = vpop.f32.mrb[60].mxu1  ;;  %3011 = vtanh.f32 %v1981_v30 }
 0x433   :  { %v2126_v48 = vpack.c.bf16 %v2105_v7, %v2104_v14  ;;  %v1790_v53 = vadd.f32 %v2706_v63, %v4018_v47  ;;  %v1781_v17 = vpop.f32.mrb[61].mxu1 }
 0x434   :  { %v1782_v44 = vadd.f32 %v4018_v47, %v1781_v17  ;;  %v2707_v42 = vpop.f32.mrb[62].mxu1 }
 0x435   :  { %2744 = vmatprep.mubr.bf16.mxu1 %v2126_v48  ;;  %v1858_v43 = vmul.f32 0.044715, %v1790_v53  ;;  %v1793_v61 = vadd.f32 %v2707_v42, %v4018_v47  ;;  %v1784_v19 = vpop.f32.mrb[63].mxu1  ;;  %v1826_v7 = vmul.f32 0.5, %v1790_v53 }
 0x436   :  { %2745 = vmatmul.mubr.bf16.gmra.mrb[84].mxu1 %v2127_v37  ;;  %v1856_v2 = vmul.f32 0.044715, %v1782_v44  ;;  %v1785_v54 = vadd.f32 %v4018_v47, %v1784_v19 }
 0x437   :  { %v1890_v38 = vmul.f32 %v1858_v43, %v1790_v53  ;;  %v1859_v45 = vmul.f32 0.044715, %v1793_v61  ;;  %v1827_v48 = vmul.f32 0.5, %v1793_v61 }
 0x438   :  { %v1888_v8 = vmul.f32 %v1856_v2, %v1782_v44  ;;  %v1857_v22 = vmul.f32 0.044715, %v1785_v54 }
 0x439   :  { %v3006_v27 = vpop.eup %3005  ;;  %v1922_v0 = vmul.f32 %v1890_v38, %v1790_v53  ;;  %v1891_v9 = vmul.f32 %v1859_v45, %v1793_v61 }
 0x43a   :  { %v3008_v31 = vpop.eup %3007  ;;  %v1920_v52 = vmul.f32 %v1888_v8, %v1782_v44  ;;  %v1889_v15 = vmul.f32 %v1857_v22, %v1785_v54  ;;  %v2046_v21 = vadd.f32 1.0, %v3006_v27 }
 0x43b   :  { %v3010_v12 = vpop.eup %3009  ;;  %v1954_v5 = vadd.f32 %v1922_v0, %v1790_v53  ;;  %v1923_v47 = vmul.f32 %v1891_v9, %v1793_v61  ;;  %v2044_v23 = vadd.f32 1.0, %v3008_v31 }
 0x43c   :  { %v3012_v59 = vpop.eup %3011  ;;  %v1952_v16 = vadd.f32 %v1920_v52, %v1782_v44  ;;  %v1921_v18 = vmul.f32 %v1889_v15, %v1785_v54  ;;  %v2047_v1 = vadd.f32 1.0, %v3010_v12  ;;  %v2078_v24 = vmul.f32 %v2046_v21, %v1822_v32 }
 0x43d   :  { %v1955_v29 = vadd.f32 %v1923_v47, %v1793_v61  ;;  %v2045_v33 = vadd.f32 1.0, %v3012_v59  ;;  %v2076_v10 = vmul.f32 %v2044_v23, %v1820_v11  ;;  %v1986_v3 = vmul.f32 0.7978846, %v1954_v5  ;;  %v4255_v61 = vld [vmem:[%s4387_s2 + $0x5] ss:$0 sm:$0xff] }
 0x43e   :  { %v1953_v36 = vadd.f32 %v1921_v18, %v1785_v54  ;;  %v2079_v6 = vmul.f32 %v2047_v1, %v1823_v25  ;;  %v1984_v4 = vmul.f32 0.7978846, %v1952_v16  ;;  %v2110_v50 = vadd.f32 %v2078_v24, %v3961_v35 }
 0x43f   :  { %v2077_v46 = vmul.f32 %v2045_v33, %v1821_v41  ;;  %v1987_v20 = vmul.f32 0.7978846, %v1955_v29  ;;  %3013 = vtanh.f32 %v1986_v3  ;;  %v2108_v40 = vadd.f32 %v2076_v10, %v3948_v51 }
 0x440   :  { %v2111_v58 = vadd.f32 %v2079_v6, %v3965_v28  ;;  %v1985_v62 = vmul.f32 0.7978846, %v1953_v36  ;;  %3015 = vtanh.f32 %v1984_v4  ;;  %v1824_v35 = vmul.f32 0.5, %v1782_v44 }
 0x441   :  { %v2109_v60 = vadd.f32 %v2077_v46, %v3953_v13  ;;  %3017 = vtanh.f32 %v1987_v20  ;;  %v1825_v51 = vmul.f32 0.5, %v1785_v54 }
 0x442   :  { %v2129_v34 = vpack.c.bf16 %v2111_v58, %v2110_v50  ;;  %3019 = vtanh.f32 %v1985_v62 }
 0x443   :  { %v2128_v56 = vpack.c.bf16 %v2109_v60, %v2108_v40 }
 0x445   :  { %2748 = vmatprep.mubr.bf16.mxu1 %v2128_v56 }
 0x446   :  { %2749 = vmatmul.mubr.bf16.gmra.mrb[88].mxu1 %v2129_v34 }
 0x449   :  { %v3014_v39 = vpop.eup %3013 }
 0x44a   :  { %v3016_v14 = vpop.eup %3015  ;;  %v2050_v30 = vadd.f32 1.0, %v3014_v39 }
 0x44b   :  { %v3018_v37 = vpop.eup %3017  ;;  %v2048_v63 = vadd.f32 1.0, %v3016_v14 }
 0x44c   :  { %v3020_v28 = vpop.eup %3019  ;;  %v2051_v17 = vadd.f32 1.0, %v3018_v37  ;;  %v2082_v42 = vmul.f32 %v2050_v30, %v1826_v7 }
 0x44d   :  { %v2049_v43 = vadd.f32 1.0, %v3020_v28  ;;  %v2080_v13 = vmul.f32 %v2048_v63, %v1824_v35 }
 0x44e   :  { %v2083_v19 = vmul.f32 %v2051_v17, %v1827_v48  ;;  %v2114_v38 = vadd.f32 %v2082_v42, %v3989_v57 }
 0x44f   :  { %v2081_v2 = vmul.f32 %v2049_v43, %v1825_v51  ;;  %v2112_v8 = vadd.f32 %v2080_v13, %v3973_v55 }
 0x450   :  { %v2115_v45 = vadd.f32 %v2083_v19, %v3996_v26 }
 0x451   :  { %v2113_v53 = vadd.f32 %v2081_v2, %v3980_v49 }
 0x452   :  { %v2131_v22 = vpack.c.bf16 %v2115_v45, %v2114_v38 }
 0x453   :  { %v2130_v44 = vpack.c.bf16 %v2113_v53, %v2112_v8 }
 0x455   :  { %2752 = vmatprep.mubr.bf16.mxu1 %v2130_v44 }
 0x456   :  { %2753 = vmatmul.mubr.bf16.gmra.mrb[92].mxu1 %v2131_v22 }
 0x4b9   :  { %v2726_v54 = vpop.f32.mrb[64].mxu1 }
 0x4ba   :  { %v2246_v27 = vadd.f32 %v2726_v54, %v4255_v61  ;;  %v2237_v0 = vpop.f32.mrb[65].mxu1 }
 0x4bb   :  { %v2238_v57 = vadd.f32 %v4255_v61, %v2237_v0  ;;  %v2727_v26 = vpop.f32.mrb[66].mxu1 }
 0x4bc   :  { %2366 = vst [vmem:[%s4388_s3 + $0x10] sm:$0xff] %v2246_v27  ;;  %v2249_v55 = vadd.f32 %v2727_v26, %v4255_v61  ;;  %v2240_v49 = vpop.f32.mrb[67].mxu1 }
 0x4bd   :  { %2364 = vst [vmem:[%s4388_s3] sm:$0xff] %v2238_v57  ;;  %v2241_v9 = vadd.f32 %v4255_v61, %v2240_v49 }
 0x4be   :  { %2367 = vst [vmem:[%s4388_s3 + $0x18] sm:$0xff] %v2249_v55 }
 0x4bf   :  { %2365 = vst [vmem:[%s4388_s3 + $0x8] sm:$0xff] %v2241_v9 }
 0x4c9   :  { %v2730_v11 = vpop.f32.mrb[68].mxu1 }
 0x4ca   :  { %v2262_v32 = vadd.f32 %v2730_v11, %v4255_v61  ;;  %v2253_v31 = vpop.f32.mrb[69].mxu1 }
 0x4cb   :  { %v2254_v52 = vadd.f32 %v4255_v61, %v2253_v31  ;;  %v2731_v15 = vpop.f32.mrb[70].mxu1 }
 0x4cc   :  { %2370 = vst [vmem:[%s4388_s3 + $0x30] sm:$0xff] %v2262_v32  ;;  %v2265_v25 = vadd.f32 %v2731_v15, %v4255_v61  ;;  %v2256_v21 = vpop.f32.mrb[71].mxu1 }
 0x4cd   :  { %2368 = vst [vmem:[%s4388_s3 + $0x20] sm:$0xff] %v2254_v52  ;;  %v2257_v12 = vadd.f32 %v4255_v61, %v2256_v21 }
 0x4ce   :  { %2371 = vst [vmem:[%s4388_s3 + $0x38] sm:$0xff] %v2265_v25 }
 0x4cf   :  { %2369 = vst [vmem:[%s4388_s3 + $0x28] sm:$0xff] %v2257_v12 }
 0x4d9   :  { %v2734_v5 = vpop.f32.mrb[72].mxu1 }
 0x4da   :  { %v2278_v47 = vadd.f32 %v2734_v5, %v4255_v61  ;;  %v2269_v41 = vpop.f32.mrb[73].mxu1 }
 0x4db   :  { %v2270_v23 = vadd.f32 %v4255_v61, %v2269_v41  ;;  %v2735_v59 = vpop.f32.mrb[74].mxu1 }
 0x4dc   :  { %2374 = vst [vmem:[%s4388_s3 + $0x50] sm:$0xff] %v2278_v47  ;;  %v2281_v16 = vadd.f32 %v2735_v59, %v4255_v61  ;;  %v2272_v18 = vpop.f32.mrb[75].mxu1 }
 0x4dd   :  { %2372 = vst [vmem:[%s4388_s3 + $0x40] sm:$0xff] %v2270_v23  ;;  %v2273_v1 = vadd.f32 %v4255_v61, %v2272_v18 }
 0x4de   :  { %2375 = vst [vmem:[%s4388_s3 + $0x58] sm:$0xff] %v2281_v16 }
 0x4df   :  { %2373 = vst [vmem:[%s4388_s3 + $0x48] sm:$0xff] %v2273_v1 }
 0x4e9   :  { %v2738_v24 = vpop.f32.mrb[76].mxu1 }
 0x4ea   :  { %v2294_v29 = vadd.f32 %v2738_v24, %v4255_v61  ;;  %v2285_v33 = vpop.f32.mrb[77].mxu1 }
 0x4eb   :  { %v2286_v10 = vadd.f32 %v4255_v61, %v2285_v33  ;;  %v2739_v3 = vpop.f32.mrb[78].mxu1 }
 0x4ec   :  { %2378 = vst [vmem:[%s4388_s3 + $0x70] sm:$0xff] %v2294_v29  ;;  %v2297_v36 = vadd.f32 %v2739_v3, %v4255_v61  ;;  %v2288_v6 = vpop.f32.mrb[79].mxu1 }
 0x4ed   :  { %2376 = vst [vmem:[%s4388_s3 + $0x60] sm:$0xff] %v2286_v10  ;;  %v2289_v4 = vadd.f32 %v4255_v61, %v2288_v6 }
 0x4ee   :  { %2379 = vst [vmem:[%s4388_s3 + $0x78] sm:$0xff] %v2297_v36 }
 0x4ef   :  { %2377 = vst [vmem:[%s4388_s3 + $0x68] sm:$0xff] %v2289_v4 }
 0x4f9   :  { %v2742_v46 = vpop.f32.mrb[80].mxu1 }
 0x4fa   :  { %v2310_v20 = vadd.f32 %v2742_v46, %v4255_v61  ;;  %v2301_v50 = vpop.f32.mrb[81].mxu1 }
 0x4fb   :  { %v2302_v58 = vadd.f32 %v4255_v61, %v2301_v50  ;;  %v2743_v62 = vpop.f32.mrb[82].mxu1 }
 0x4fc   :  { %2382 = vst [vmem:[%s4388_s3 + $0x90] sm:$0xff] %v2310_v20  ;;  %v2313_v40 = vadd.f32 %v2743_v62, %v4255_v61  ;;  %v2304_v60 = vpop.f32.mrb[83].mxu1 }
 0x4fd   :  { %2380 = vst [vmem:[%s4388_s3 + $0x80] sm:$0xff] %v2302_v58  ;;  %v2305_v34 = vadd.f32 %v4255_v61, %v2304_v60 }
 0x4fe   :  { %2383 = vst [vmem:[%s4388_s3 + $0x98] sm:$0xff] %v2313_v40 }
 0x4ff   :  { %2381 = vst [vmem:[%s4388_s3 + $0x88] sm:$0xff] %v2305_v34 }
 0x509   :  { %v2746_v56 = vpop.f32.mrb[84].mxu1 }
 0x50a   :  { %v2326_v39 = vadd.f32 %v2746_v56, %v4255_v61  ;;  %v2317_v14 = vpop.f32.mrb[85].mxu1 }
 0x50b   :  { %v2318_v7 = vadd.f32 %v4255_v61, %v2317_v14  ;;  %v2747_v30 = vpop.f32.mrb[86].mxu1 }
 0x50c   :  { %2386 = vst [vmem:[%s4388_s3 + $0xb0] sm:$0xff] %v2326_v39  ;;  %v2329_v37 = vadd.f32 %v2747_v30, %v4255_v61  ;;  %v2320_v35 = vpop.f32.mrb[87].mxu1 }
 0x50d   :  { %2384 = vst [vmem:[%s4388_s3 + $0xa0] sm:$0xff] %v2318_v7  ;;  %v2321_v63 = vadd.f32 %v4255_v61, %v2320_v35 }
 0x50e   :  { %2387 = vst [vmem:[%s4388_s3 + $0xb8] sm:$0xff] %v2329_v37 }
 0x50f   :  { %2385 = vst [vmem:[%s4388_s3 + $0xa8] sm:$0xff] %v2321_v63 }
 0x519   :  { %v2750_v28 = vpop.f32.mrb[88].mxu1 }
 0x51a   :  { %v2342_v48 = vadd.f32 %v2750_v28, %v4255_v61  ;;  %v2333_v17 = vpop.f32.mrb[89].mxu1 }
 0x51b   :  { %v2334_v42 = vadd.f32 %v4255_v61, %v2333_v17  ;;  %v2751_v51 = vpop.f32.mrb[90].mxu1 }
 0x51c   :  { %2390 = vst [vmem:[%s4388_s3 + $0xd0] sm:$0xff] %v2342_v48  ;;  %v2345_v43 = vadd.f32 %v2751_v51, %v4255_v61  ;;  %v2336_v13 = vpop.f32.mrb[91].mxu1 }
 0x51d   :  { %2388 = vst [vmem:[%s4388_s3 + $0xc0] sm:$0xff] %v2334_v42  ;;  %v2337_v19 = vadd.f32 %v4255_v61, %v2336_v13 }
 0x51e   :  { %2391 = vst [vmem:[%s4388_s3 + $0xd8] sm:$0xff] %v2345_v43 }
 0x51f   :  { %2389 = vst [vmem:[%s4388_s3 + $0xc8] sm:$0xff] %v2337_v19 }
 0x529   :  { %v2754_v2 = vpop.f32.mrb[92].mxu1 }
 0x52a   :  { %v2358_v38 = vadd.f32 %v2754_v2, %v4255_v61  ;;  %v2349_v45 = vpop.f32.mrb[93].mxu1 }
 0x52b   :  { %v2350_v8 = vadd.f32 %v4255_v61, %v2349_v45  ;;  %v2755_v53 = vpop.f32.mrb[94].mxu1 }
 0x52c   :  { %2394 = vst [vmem:[%s4388_s3 + $0xf0] sm:$0xff] %v2358_v38  ;;  %v2361_v22 = vadd.f32 %v2755_v53, %v4255_v61  ;;  %v2352_v44 = vpop.f32.mrb[95].mxu1 }
 0x52d   :  { %2392 = vst [vmem:[%s4388_s3 + $0xe0] sm:$0xff] %v2350_v8  ;;  %v2353_v54 = vadd.f32 %v4255_v61, %v2352_v44 }
 0x52e   :  { %2395 = vst [vmem:[%s4388_s3 + $0xf8] sm:$0xff] %v2361_v22 }
 0x52f   :  { %2393 = vst [vmem:[%s4388_s3 + $0xe8] sm:$0xff] %v2353_v54 }

</bundles_post_ra>
